<compile_context>
chip_gen: v7x
topology: tpu7x:2x2x1
jax: 0.10.0
libtpu: 0.0.40
codegen_flags: <defaults>
</compile_context>

<pallas_src>
import functools

import jax
import jax.numpy as jnp
from jax.experimental import pallas as pl
from jax.experimental.pallas import tpu as pltpu

NETWORK_CONFIG = {
    "network": {
        "batch_size": 2,
        "num_classes": 10,
        "in_channels": 4,
        "input_height": 16,
        "input_width": 16,
    },
    # stride=1 / padding=1 keeps spatial dims, consistent with the module's
    # flattened_size = C_out_last * H * W assumption.
    "conv_layers": [
        {"out_channels": 8, "kernel_size": 3, "stride": 1, "padding": 1},
        {"out_channels": 16, "kernel_size": 3, "stride": 1, "padding": 1},
    ],
    "fc_layers": [
        {"out_features": 32},
        {"out_features": -1},  # -1 -> num_classes
    ],
}


# ------------------------------- Fused kernel ------------------------------- #
def _toy_fused_kernel(x_ref, wc1_ref, bc1_ref, wc2_ref, bc2_ref,
                      w1_ref, b1_ref, w2_ref, b2_ref, o_ref,
                      xp1_ref, xp2_ref, flat_ref,
                      *, n, h, w, c0, c1, c2, kh1, kh2):
    """Whole forward pass; everything except the (n, num_classes) logits stays in VMEM.

    x_ref   : (n, h, w*c0)          f32   NHWC input, (w, c) flattened on lanes (no padding)
    wc1_ref : (kh1, w*c0, w*c1)     bf16  banded block-Toeplitz conv1 weights (kx folded in)
    wc2_ref : (kh2, w*c1, w*c2)     bf16  banded block-Toeplitz conv2 weights
    bc*_ref : (1, w*c*)             f32   conv biases tiled across the w blocks
    w1_ref  : (h*w*c2, d1)          bf16  fc1 weights, rows in (h, w, c) order
    w2_ref  : (d1, num_classes)     bf16
    xp1_ref : (n, h+2, w*c0)        f32   scratch: height-halo-padded input
    xp2_ref : (n, h+2, w*c1)        f32   scratch: height-halo-padded conv1 activation
    flat_ref: (n, h*w*c2)           f32   scratch: flattened conv2 activation for fc1
    """
    f32, bf16 = jnp.float32, jnp.bfloat16

    # ---- height-halo padding of the input inside VMEM (zero only halo rows) ---- #
    xp1_ref[:, pl.ds(0, 1), :] = jnp.zeros((n, 1, w * c0), f32)
    xp1_ref[:, pl.ds(h + 1, 1), :] = jnp.zeros((n, 1, w * c0), f32)
    xp1_ref[:, pl.ds(1, h), :] = x_ref[...]

    # ---- conv1 + ReLU: kh1 banded block-Toeplitz MXU matmuls (kx folded) ------- #
    acc1 = jnp.zeros((n * h, w * c1), f32)
    for ky in range(kh1):
        win = xp1_ref[:, pl.ds(ky, h), :].reshape(n * h, w * c0).astype(bf16)
        acc1 = acc1 + jnp.dot(win, wc1_ref[ky], preferred_element_type=f32)
    act1 = jnp.maximum(acc1 + bc1_ref[...], 0.0)                    # (n*h, w*c1) f32

    # ---- re-pad conv1 activation by height only (zero only halo rows) ---------- #
    xp2_ref[:, pl.ds(0, 1), :] = jnp.zeros((n, 1, w * c1), f32)
    xp2_ref[:, pl.ds(h + 1, 1), :] = jnp.zeros((n, 1, w * c1), f32)
    xp2_ref[:, pl.ds(1, h), :] = act1.reshape(n, h, w * c1)

    # ---- conv2 + ReLU ----------------------------------------------------------- #
    acc2 = jnp.zeros((n * h, w * c2), f32)
    for ky in range(kh2):
        win = xp2_ref[:, pl.ds(ky, h), :].reshape(n * h, w * c1).astype(bf16)
        acc2 = acc2 + jnp.dot(win, wc2_ref[ky], preferred_element_type=f32)
    act2 = jnp.maximum(acc2 + bc2_ref[...], 0.0)                    # (n*h, w*c2) f32

    # ---- flatten (n, h, w, c) -> (n, h*w*c2) via lane-aligned scratch stores ---- #
    act2_3d = act2.reshape(n, h, w * c2)
    for hh in range(h):
        flat_ref[:, pl.ds(hh * w * c2, w * c2)] = act2_3d[:, hh, :]

    # ---- fc1 + ReLU: ONE dot with K = h*w*c2 (accumulation stays in the MXU) ---- #
    h1 = jnp.dot(flat_ref[...].astype(bf16), w1_ref[...], preferred_element_type=f32)
    h1 = jnp.maximum(h1 + b1_ref[...], 0.0)                         # (n, d1) f32

    # ---- fc2 (no ReLU on logits) ------------------------------------------------ #
    logits = jnp.dot(h1.astype(bf16), w2_ref[...], preferred_element_type=f32)
    o_ref[...] = (logits + b2_ref[...]).astype(o_ref.dtype)


@jax.jit
def toy_network_forward(kparams, x_nchw):
    wc1, bc1, wc2, bc2, w1, b1, w2, b2 = kparams
    n, c0, h, w = x_nchw.shape
    c1 = bc1.shape[1] // w
    c2 = bc2.shape[1] // w
    num_classes = b2.shape[1]
    kh1 = wc1.shape[0]
    kh2 = wc2.shape[0]

    # NCHW -> (N, H, W*C0): (w, c) flattened onto lanes.  No padding anywhere:
    # width halo is folded into the block-Toeplitz weights, height halo is
    # handled inside the kernel via a small VMEM scratch.
    x = jnp.transpose(x_nchw, (0, 2, 3, 1)).reshape(n, h, w * c0).astype(jnp.float32)

    kern = functools.partial(_toy_fused_kernel, n=n, h=h, w=w,
                             c0=c0, c1=c1, c2=c2, kh1=kh1, kh2=kh2)
    return pl.pallas_call(
        kern,
        out_shape=jax.ShapeDtypeStruct((n, num_classes), jnp.float32),
        grid=(1,),
        # Full-array blocks (block_shape == array shape satisfies the (8,128) rule);
        # total weights + activations + scratch are well under 1.5 MiB, so no tiling
        # is needed for VMEM on any generation (v5e/v6e 128 MiB, v7x 64 MiB).
        in_specs=[
            pl.BlockSpec(x.shape, lambda i: (0, 0, 0)),
            pl.BlockSpec(wc1.shape, lambda i: (0, 0, 0)),
            pl.BlockSpec(bc1.shape, lambda i: (0, 0)),
            pl.BlockSpec(wc2.shape, lambda i: (0, 0, 0)),
            pl.BlockSpec(bc2.shape, lambda i: (0, 0)),
            pl.BlockSpec(w1.shape, lambda i: (0, 0)),
            pl.BlockSpec(b1.shape, lambda i: (0, 0)),
            pl.BlockSpec(w2.shape, lambda i: (0, 0)),
            pl.BlockSpec(b2.shape, lambda i: (0, 0)),
        ],
        out_specs=pl.BlockSpec((n, num_classes), lambda i: (0, 0)),
        scratch_shapes=[
            pltpu.VMEM((n, h + 2, w * c0), jnp.float32),   # padded input
            pltpu.VMEM((n, h + 2, w * c1), jnp.float32),   # padded conv1 activation
            pltpu.VMEM((n, h * w * c2), jnp.float32),      # flattened conv2 activation
        ],
        compiler_params=pltpu.CompilerParams(dimension_semantics=("arbitrary",)),
    )(x, wc1, bc1, wc2, bc2, w1, b1, w2, b2)


# --------------------- Parameter init (torch layouts) ----------------------- #
def init_params(key, cfg):
    net = cfg["network"]
    params = {"conv": [], "fc": []}
    in_ch = net["in_channels"]
    for cc in cfg["conv_layers"]:
        key, kw_, kb_ = jax.random.split(key, 3)
        out_ch, ks = cc["out_channels"], cc["kernel_size"]
        fan_in = in_ch * ks * ks
        w = jax.random.normal(kw_, (out_ch, in_ch, ks, ks), jnp.float32) / jnp.sqrt(fan_in)
        b = jax.random.normal(kb_, (out_ch,), jnp.float32) * 0.01
        params["conv"].append((w, b))
        in_ch = out_ch

    in_feat = in_ch * net["input_height"] * net["input_width"]
    for fc in cfg["fc_layers"]:
        out_feat = fc["out_features"]
        if out_feat == -1:
            out_feat = net["num_classes"]
        key, kw_, kb_ = jax.random.split(key, 3)
        # torch.nn.Linear layout: weight (out, in), bias (out,)
        w = jax.random.normal(kw_, (out_feat, in_feat), jnp.float32) / jnp.sqrt(in_feat)
        b = jax.random.normal(kb_, (out_feat,), jnp.float32) * 0.01
        params["fc"].append((w, b))
        in_feat = out_feat
    return params


# ------------- One-time conversion to lane-dense kernel layouts ------------- #
def prepare_kernel_params(params, cfg):
    # Assumes stride=1 and "same" padding (padding = (k-1)//2), as implied by the
    # module's flattened_size = C_out_last * H * W.
    assert len(params["conv"]) == 2 and len(params["fc"]) == 2
    net = cfg["network"]
    height, width = net["input_height"], net["input_width"]

    def conv_toeplitz(w_oihw, padding):
        """Fold kx into per-ky banded block-Toeplitz matrices: (kh, W*Cin, W*Cout)."""
        _, _, kh, kw = w_oihw.shape
        b = jnp.transpose(w_oihw, (2, 3, 1, 0))            # (kh, kw, c_in, c_out)
        mats = []
        for ky in range(kh):
            t = None
            for kx in range(kw):
                # output pixel x reads input pixel x + kx - padding (zero outside [0, W))
                shift = jnp.eye(width, k=padding - kx, dtype=w_oihw.dtype)
                blk = jnp.kron(shift, b[ky, kx])
                t = blk if t is None else t + blk
            mats.append(t)
        return jnp.stack(mats, axis=0).astype(jnp.bfloat16)

    def conv_bias_row(bias):
        return jnp.tile(bias, width).reshape(1, -1).astype(jnp.float32)

    (wconv1, bconv1), (wconv2, bconv2) = params["conv"]
    (wfc1, bfc1), (wfc2, bfc2) = params["fc"]
    pad1 = cfg["conv_layers"][0]["padding"]
    pad2 = cfg["conv_layers"][1]["padding"]
    c2 = wconv2.shape[0]
    d1 = wfc1.shape[0]
    # torch Linear weight is (out, in) with `in` ordered (c, h, w) (flatten of NCHW);
    # permute the rows once to (h, w, c) so the NHWC-flattened slab is consumed
    # directly, then flatten to (h*w*c, out) for the one-shot fc1 dot.
    w1 = (wfc1.reshape(d1, c2, height, width)
              .transpose(2, 3, 1, 0)                       # (h, w, c, out)
              .reshape(height * width * c2, d1)
              .astype(jnp.bfloat16))
    return (conv_toeplitz(wconv1, pad1), conv_bias_row(bconv1),
            conv_toeplitz(wconv2, pad2), conv_bias_row(bconv2),
            w1, bfc1.reshape(1, -1).astype(jnp.float32),
            jnp.transpose(wfc2).astype(jnp.bfloat16),
            bfc2.reshape(1, -1).astype(jnp.float32))


# ------------------------- Pure-JAX (torch-equivalent) reference ------------- #
def torch_reference(params, x_nchw, num_classes):
    x = x_nchw
    for w, b in params["conv"]:
        x = jax.lax.conv_general_dilated(
            x, w, window_strides=(1, 1), padding=((1, 1), (1, 1)),
            dimension_numbers=("NCHW", "OIHW", "NCHW"),
            precision=jax.lax.Precision.HIGHEST)
        x = jnp.maximum(x + b[None, :, None, None], 0.0)
    x = x.reshape(x.shape[0], -1)                       # torch.flatten(x, 1) on NCHW
    for w, b in params["fc"]:
        x = jnp.dot(x, w.T, precision=jax.lax.Precision.HIGHEST) + b
        if w.shape[0] != num_classes:
            x = jnp.maximum(x, 0.0)
    return x


if __name__ == "__main__":
    cfg = NETWORK_CONFIG
    net = cfg["network"]
    key = jax.random.PRNGKey(0)
    key, kx = jax.random.split(key)
    x = jax.random.normal(
        kx,
        (net["batch_size"], net["in_channels"], net["input_height"], net["input_width"]),
        jnp.float32,
    )
    params = init_params(key, cfg)
    kparams = prepare_kernel_params(params, cfg)

    out = toy_network_forward(kparams, x)
    out = jax.block_until_ready(out)

    assert out.shape == (net["batch_size"], net["num_classes"]), out.shape
    assert out.dtype == jnp.float32
    ref = torch_reference(params, x, net["num_classes"])
    assert jnp.allclose(out, ref, atol=1e-1, rtol=1e-1), float(jnp.max(jnp.abs(out - ref)))
    print("KERNEL_OK")
</pallas_src>

<mosaic_0001>
module attributes {stable_mosaic.version = 11 : i64} {
  func.func @_toy_fused_kernel(%arg0: i32, %arg1: memref<2x16x64xf32, #tpu.memory_space<vmem>>, %arg2: memref<3x64x128xbf16, #tpu.memory_space<vmem>>, %arg3: memref<1x128xf32, #tpu.memory_space<vmem>>, %arg4: memref<3x128x256xbf16, #tpu.memory_space<vmem>>, %arg5: memref<1x256xf32, #tpu.memory_space<vmem>>, %arg6: memref<4096x32xbf16, #tpu.memory_space<vmem>>, %arg7: memref<1x32xf32, #tpu.memory_space<vmem>>, %arg8: memref<32x10xbf16, #tpu.memory_space<vmem>>, %arg9: memref<1x10xf32, #tpu.memory_space<vmem>>, %arg10: memref<2x10xf32, #tpu.memory_space<vmem>>, %arg11: memref<2x18x64xf32, #tpu.memory_space<vmem>>, %arg12: memref<2x18x128xf32, #tpu.memory_space<vmem>>, %arg13: memref<2x4096xf32, #tpu.memory_space<vmem>>) attributes {dimension_semantics = [#tpu.dimension_semantics<arbitrary>], iteration_bounds = array<i64: 1>, scalar_prefetch = 0 : i64, scratch_operands = 3 : i64, tpu.core_type = #tpu.core_type<tc>, window_params = [{pipeline_mode = #tpu.pipeline_mode<synchronous>, transform_indices = @transform_0, window_bounds = array<i64: 2, 16, 64>}, {pipeline_mode = #tpu.pipeline_mode<synchronous>, transform_indices = @transform_1, window_bounds = array<i64: 3, 64, 128>}, {pipeline_mode = #tpu.pipeline_mode<synchronous>, transform_indices = @transform_2, window_bounds = array<i64: 1, 128>}, {pipeline_mode = #tpu.pipeline_mode<synchronous>, transform_indices = @transform_3, window_bounds = array<i64: 3, 128, 256>}, {pipeline_mode = #tpu.pipeline_mode<synchronous>, transform_indices = @transform_4, window_bounds = array<i64: 1, 256>}, {pipeline_mode = #tpu.pipeline_mode<synchronous>, transform_indices = @transform_5, window_bounds = array<i64: 4096, 32>}, {pipeline_mode = #tpu.pipeline_mode<synchronous>, transform_indices = @transform_6, window_bounds = array<i64: 1, 32>}, {pipeline_mode = #tpu.pipeline_mode<synchronous>, transform_indices = @transform_7, window_bounds = array<i64: 32, 10>}, {pipeline_mode = #tpu.pipeline_mode<synchronous>, transform_indices = @transform_8, window_bounds = array<i64: 1, 10>}, {pipeline_mode = #tpu.pipeline_mode<synchronous>, transform_indices = @transform_9, window_bounds = array<i64: 2, 10>}]} {
    %cst = arith.constant 0.000000e+00 : f32
    %0 = vector.broadcast %cst : f32 to vector<2x1x64xf32>
    %c0 = arith.constant 0 : index
    %c0_0 = arith.constant 0 : index
    %c0_1 = arith.constant 0 : index
    %1 = vector.load %arg11[%c0, %c0_0, %c0_1] : memref<2x18x64xf32, #tpu.memory_space<vmem>>, vector<2x1x64xf32>
    tpu.vector_store %arg11[%c0, %c0_0, %c0_1], %0 {strides = array<i32>} : memref<2x18x64xf32, #tpu.memory_space<vmem>>, vector<2x1x64xf32>,
    %cst_2 = arith.constant 0.000000e+00 : f32
    %2 = vector.broadcast %cst_2 : f32 to vector<2x1x64xf32>
    %c0_3 = arith.constant 0 : index
    %c17 = arith.constant 17 : index
    %c0_4 = arith.constant 0 : index
    %3 = vector.load %arg11[%c0_3, %c17, %c0_4] : memref<2x18x64xf32, #tpu.memory_space<vmem>>, vector<2x1x64xf32>
    tpu.vector_store %arg11[%c0_3, %c17, %c0_4], %2 {strides = array<i32>} : memref<2x18x64xf32, #tpu.memory_space<vmem>>, vector<2x1x64xf32>,
    %c0_5 = arith.constant 0 : index
    %c0_6 = arith.constant 0 : index
    %c0_7 = arith.constant 0 : index
    %4 = vector.load %arg1[%c0_5, %c0_6, %c0_7] : memref<2x16x64xf32, #tpu.memory_space<vmem>>, vector<2x16x64xf32>
    %c0_8 = arith.constant 0 : index
    %c1 = arith.constant 1 : index
    %c0_9 = arith.constant 0 : index
    %5 = vector.load %arg11[%c0_8, %c1, %c0_9] : memref<2x18x64xf32, #tpu.memory_space<vmem>>, vector<2x16x64xf32>
    tpu.vector_store %arg11[%c0_8, %c1, %c0_9], %4 {strides = array<i32>} : memref<2x18x64xf32, #tpu.memory_space<vmem>>, vector<2x16x64xf32>,
    %cst_10 = arith.constant 0.000000e+00 : f32
    %6 = vector.broadcast %cst_10 : f32 to vector<32x128xf32>
    %c0_11 = arith.constant 0 : index
    %c0_12 = arith.constant 0 : index
    %c0_13 = arith.constant 0 : index
    %7 = vector.load %arg11[%c0_11, %c0_12, %c0_13] : memref<2x18x64xf32, #tpu.memory_space<vmem>>, vector<2x16x64xf32>
    %8 = vector.shape_cast %7 : vector<2x16x64xf32> to vector<32x64xf32>
    %9 = arith.truncf %8 : vector<32x64xf32> to vector<32x64xbf16>
    %c0_14 = arith.constant 0 : index
    %c0_15 = arith.constant 0 : index
    %c0_16 = arith.constant 0 : index
    %10 = vector.load %arg2[%c0_14, %c0_15, %c0_16] : memref<3x64x128xbf16, #tpu.memory_space<vmem>>, vector<1x64x128xbf16>
    %11 = vector.shape_cast %10 : vector<1x64x128xbf16> to vector<64x128xbf16>
    %cst_17 = arith.constant dense<0.000000e+00> : vector<32x128xf32>
    %12 = tpu.matmul %9, %11, %cst_17 {dimension_numbers = #tpu.dot_dimension_numbers<[1], [0], [0], [1], [0, 0, 1, 1], [], []>} : vector<32x64xbf16>, vector<64x128xbf16>, vector<32x128xf32> -> vector<32x128xf32>
    %13 = arith.addf %6, %12 : vector<32x128xf32>
    %c0_18 = arith.constant 0 : index
    %c1_19 = arith.constant 1 : index
    %c0_20 = arith.constant 0 : index
    %14 = vector.load %arg11[%c0_18, %c1_19, %c0_20] : memref<2x18x64xf32, #tpu.memory_space<vmem>>, vector<2x16x64xf32>
    %15 = vector.shape_cast %14 : vector<2x16x64xf32> to vector<32x64xf32>
    %16 = arith.truncf %15 : vector<32x64xf32> to vector<32x64xbf16>
    %c1_21 = arith.constant 1 : index
    %c0_22 = arith.constant 0 : index
    %c0_23 = arith.constant 0 : index
    %17 = vector.load %arg2[%c1_21, %c0_22, %c0_23] : memref<3x64x128xbf16, #tpu.memory_space<vmem>>, vector<1x64x128xbf16>
    %18 = vector.shape_cast %17 : vector<1x64x128xbf16> to vector<64x128xbf16>
    %cst_24 = arith.constant dense<0.000000e+00> : vector<32x128xf32>
    %19 = tpu.matmul %16, %18, %cst_24 {dimension_numbers = #tpu.dot_dimension_numbers<[1], [0], [0], [1], [0, 0, 1, 1], [], []>} : vector<32x64xbf16>, vector<64x128xbf16>, vector<32x128xf32> -> vector<32x128xf32>
    %20 = arith.addf %13, %19 : vector<32x128xf32>
    %c0_25 = arith.constant 0 : index
    %c2 = arith.constant 2 : index
    %c0_26 = arith.constant 0 : index
    %21 = vector.load %arg11[%c0_25, %c2, %c0_26] : memref<2x18x64xf32, #tpu.memory_space<vmem>>, vector<2x16x64xf32>
    %22 = vector.shape_cast %21 : vector<2x16x64xf32> to vector<32x64xf32>
    %23 = arith.truncf %22 : vector<32x64xf32> to vector<32x64xbf16>
    %c2_27 = arith.constant 2 : index
    %c0_28 = arith.constant 0 : index
    %c0_29 = arith.constant 0 : index
    %24 = vector.load %arg2[%c2_27, %c0_28, %c0_29] : memref<3x64x128xbf16, #tpu.memory_space<vmem>>, vector<1x64x128xbf16>
    %25 = vector.shape_cast %24 : vector<1x64x128xbf16> to vector<64x128xbf16>
    %cst_30 = arith.constant dense<0.000000e+00> : vector<32x128xf32>
    %26 = tpu.matmul %23, %25, %cst_30 {dimension_numbers = #tpu.dot_dimension_numbers<[1], [0], [0], [1], [0, 0, 1, 1], [], []>} : vector<32x64xbf16>, vector<64x128xbf16>, vector<32x128xf32> -> vector<32x128xf32>
    %27 = arith.addf %20, %26 : vector<32x128xf32>
    %c0_31 = arith.constant 0 : index
    %c0_32 = arith.constant 0 : index
    %28 = vector.load %arg3[%c0_31, %c0_32] : memref<1x128xf32, #tpu.memory_space<vmem>>, vector<1x128xf32>
    %29 = vector.broadcast %28 : vector<1x128xf32> to vector<32x128xf32>
    %30 = arith.addf %27, %29 : vector<32x128xf32>
    %cst_33 = arith.constant 0.000000e+00 : f32
    %31 = vector.broadcast %cst_33 : f32 to vector<32x128xf32>
    %32 = arith.maximumf %30, %31 : vector<32x128xf32>
    %cst_34 = arith.constant 0.000000e+00 : f32
    %33 = vector.broadcast %cst_34 : f32 to vector<2x1x128xf32>
    %c0_35 = arith.constant 0 : index
    %c0_36 = arith.constant 0 : index
    %c0_37 = arith.constant 0 : index
    %34 = vector.load %arg12[%c0_35, %c0_36, %c0_37] : memref<2x18x128xf32, #tpu.memory_space<vmem>>, vector<2x1x128xf32>
    tpu.vector_store %arg12[%c0_35, %c0_36, %c0_37], %33 {strides = array<i32>} : memref<2x18x128xf32, #tpu.memory_space<vmem>>, vector<2x1x128xf32>,
    %cst_38 = arith.constant 0.000000e+00 : f32
    %35 = vector.broadcast %cst_38 : f32 to vector<2x1x128xf32>
    %c0_39 = arith.constant 0 : index
    %c17_40 = arith.constant 17 : index
    %c0_41 = arith.constant 0 : index
    %36 = vector.load %arg12[%c0_39, %c17_40, %c0_41] : memref<2x18x128xf32, #tpu.memory_space<vmem>>, vector<2x1x128xf32>
    tpu.vector_store %arg12[%c0_39, %c17_40, %c0_41], %35 {strides = array<i32>} : memref<2x18x128xf32, #tpu.memory_space<vmem>>, vector<2x1x128xf32>,
    %37 = vector.shape_cast %32 : vector<32x128xf32> to vector<2x16x128xf32>
    %c0_42 = arith.constant 0 : index
    %c1_43 = arith.constant 1 : index
    %c0_44 = arith.constant 0 : index
    %38 = vector.load %arg12[%c0_42, %c1_43, %c0_44] : memref<2x18x128xf32, #tpu.memory_space<vmem>>, vector<2x16x128xf32>
    tpu.vector_store %arg12[%c0_42, %c1_43, %c0_44], %37 {strides = array<i32>} : memref<2x18x128xf32, #tpu.memory_space<vmem>>, vector<2x16x128xf32>,
    %cst_45 = arith.constant 0.000000e+00 : f32
    %39 = vector.broadcast %cst_45 : f32 to vector<32x256xf32>
    %c0_46 = arith.constant 0 : index
    %c0_47 = arith.constant 0 : index
    %c0_48 = arith.constant 0 : index
    %40 = vector.load %arg12[%c0_46, %c0_47, %c0_48] : memref<2x18x128xf32, #tpu.memory_space<vmem>>, vector<2x16x128xf32>
    %41 = vector.shape_cast %40 : vector<2x16x128xf32> to vector<32x128xf32>
    %42 = arith.truncf %41 : vector<32x128xf32> to vector<32x128xbf16>
    %c0_49 = arith.constant 0 : index
    %c0_50 = arith.constant 0 : index
    %c0_51 = arith.constant 0 : index
    %43 = vector.load %arg4[%c0_49, %c0_50, %c0_51] : memref<3x128x256xbf16, #tpu.memory_space<vmem>>, vector<1x128x256xbf16>
    %44 = vector.shape_cast %43 : vector<1x128x256xbf16> to vector<128x256xbf16>
    %cst_52 = arith.constant dense<0.000000e+00> : vector<32x256xf32>
    %45 = tpu.matmul %42, %44, %cst_52 {dimension_numbers = #tpu.dot_dimension_numbers<[1], [0], [0], [1], [0, 0, 1, 1], [], []>} : vector<32x128xbf16>, vector<128x256xbf16>, vector<32x256xf32> -> vector<32x256xf32>
    %46 = arith.addf %39, %45 : vector<32x256xf32>
    %c0_53 = arith.constant 0 : index
    %c1_54 = arith.constant 1 : index
    %c0_55 = arith.constant 0 : index
    %47 = vector.load %arg12[%c0_53, %c1_54, %c0_55] : memref<2x18x128xf32, #tpu.memory_space<vmem>>, vector<2x16x128xf32>
    %48 = vector.shape_cast %47 : vector<2x16x128xf32> to vector<32x128xf32>
    %49 = arith.truncf %48 : vector<32x128xf32> to vector<32x128xbf16>
    %c1_56 = arith.constant 1 : index
    %c0_57 = arith.constant 0 : index
    %c0_58 = arith.constant 0 : index
    %50 = vector.load %arg4[%c1_56, %c0_57, %c0_58] : memref<3x128x256xbf16, #tpu.memory_space<vmem>>, vector<1x128x256xbf16>
    %51 = vector.shape_cast %50 : vector<1x128x256xbf16> to vector<128x256xbf16>
    %cst_59 = arith.constant dense<0.000000e+00> : vector<32x256xf32>
    %52 = tpu.matmul %49, %51, %cst_59 {dimension_numbers = #tpu.dot_dimension_numbers<[1], [0], [0], [1], [0, 0, 1, 1], [], []>} : vector<32x128xbf16>, vector<128x256xbf16>, vector<32x256xf32> -> vector<32x256xf32>
    %53 = arith.addf %46, %52 : vector<32x256xf32>
    %c0_60 = arith.constant 0 : index
    %c2_61 = arith.constant 2 : index
    %c0_62 = arith.constant 0 : index
    %54 = vector.load %arg12[%c0_60, %c2_61, %c0_62] : memref<2x18x128xf32, #tpu.memory_space<vmem>>, vector<2x16x128xf32>
    %55 = vector.shape_cast %54 : vector<2x16x128xf32> to vector<32x128xf32>
    %56 = arith.truncf %55 : vector<32x128xf32> to vector<32x128xbf16>
    %c2_63 = arith.constant 2 : index
    %c0_64 = arith.constant 0 : index
    %c0_65 = arith.constant 0 : index
    %57 = vector.load %arg4[%c2_63, %c0_64, %c0_65] : memref<3x128x256xbf16, #tpu.memory_space<vmem>>, vector<1x128x256xbf16>
    %58 = vector.shape_cast %57 : vector<1x128x256xbf16> to vector<128x256xbf16>
    %cst_66 = arith.constant dense<0.000000e+00> : vector<32x256xf32>
    %59 = tpu.matmul %56, %58, %cst_66 {dimension_numbers = #tpu.dot_dimension_numbers<[1], [0], [0], [1], [0, 0, 1, 1], [], []>} : vector<32x128xbf16>, vector<128x256xbf16>, vector<32x256xf32> -> vector<32x256xf32>
    %60 = arith.addf %53, %59 : vector<32x256xf32>
    %c0_67 = arith.constant 0 : index
    %c0_68 = arith.constant 0 : index
    %61 = vector.load %arg5[%c0_67, %c0_68] : memref<1x256xf32, #tpu.memory_space<vmem>>, vector<1x256xf32>
    %62 = vector.broadcast %61 : vector<1x256xf32> to vector<32x256xf32>
    %63 = arith.addf %60, %62 : vector<32x256xf32>
    %cst_69 = arith.constant 0.000000e+00 : f32
    %64 = vector.broadcast %cst_69 : f32 to vector<32x256xf32>
    %65 = arith.maximumf %63, %64 : vector<32x256xf32>
    %66 = vector.shape_cast %65 : vector<32x256xf32> to vector<2x16x256xf32>
    %67 = vector.extract_strided_slice %66 {offsets = [0, 0, 0], sizes = [2, 1, 256], strides = [1, 1, 1]} : vector<2x16x256xf32> to vector<2x1x256xf32>
    %68 = vector.shape_cast %67 : vector<2x1x256xf32> to vector<2x256xf32>
    %c0_70 = arith.constant 0 : index
    %c0_71 = arith.constant 0 : index
    %69 = vector.load %arg13[%c0_70, %c0_71] : memref<2x4096xf32, #tpu.memory_space<vmem>>, vector<2x256xf32>
    tpu.vector_store %arg13[%c0_70, %c0_71], %68 {strides = array<i32>} : memref<2x4096xf32, #tpu.memory_space<vmem>>, vector<2x256xf32>,
    %70 = vector.extract_strided_slice %66 {offsets = [0, 1, 0], sizes = [2, 1, 256], strides = [1, 1, 1]} : vector<2x16x256xf32> to vector<2x1x256xf32>
    %71 = vector.shape_cast %70 : vector<2x1x256xf32> to vector<2x256xf32>
    %c0_72 = arith.constant 0 : index
    %c256 = arith.constant 256 : index
    %72 = vector.load %arg13[%c0_72, %c256] : memref<2x4096xf32, #tpu.memory_space<vmem>>, vector<2x256xf32>
    tpu.vector_store %arg13[%c0_72, %c256], %71 {strides = array<i32>} : memref<2x4096xf32, #tpu.memory_space<vmem>>, vector<2x256xf32>,
    %73 = vector.extract_strided_slice %66 {offsets = [0, 2, 0], sizes = [2, 1, 256], strides = [1, 1, 1]} : vector<2x16x256xf32> to vector<2x1x256xf32>
    %74 = vector.shape_cast %73 : vector<2x1x256xf32> to vector<2x256xf32>
    %c0_73 = arith.constant 0 : index
    %c512 = arith.constant 512 : index
    %75 = vector.load %arg13[%c0_73, %c512] : memref<2x4096xf32, #tpu.memory_space<vmem>>, vector<2x256xf32>
    tpu.vector_store %arg13[%c0_73, %c512], %74 {strides = array<i32>} : memref<2x4096xf32, #tpu.memory_space<vmem>>, vector<2x256xf32>,
    %76 = vector.extract_strided_slice %66 {offsets = [0, 3, 0], sizes = [2, 1, 256], strides = [1, 1, 1]} : vector<2x16x256xf32> to vector<2x1x256xf32>
    %77 = vector.shape_cast %76 : vector<2x1x256xf32> to vector<2x256xf32>
    %c0_74 = arith.constant 0 : index
    %c768 = arith.constant 768 : index
    %78 = vector.load %arg13[%c0_74, %c768] : memref<2x4096xf32, #tpu.memory_space<vmem>>, vector<2x256xf32>
    tpu.vector_store %arg13[%c0_74, %c768], %77 {strides = array<i32>} : memref<2x4096xf32, #tpu.memory_space<vmem>>, vector<2x256xf32>,
    %79 = vector.extract_strided_slice %66 {offsets = [0, 4, 0], sizes = [2, 1, 256], strides = [1, 1, 1]} : vector<2x16x256xf32> to vector<2x1x256xf32>
    %80 = vector.shape_cast %79 : vector<2x1x256xf32> to vector<2x256xf32>
    %c0_75 = arith.constant 0 : index
    %c1024 = arith.constant 1024 : index
    %81 = vector.load %arg13[%c0_75, %c1024] : memref<2x4096xf32, #tpu.memory_space<vmem>>, vector<2x256xf32>
    tpu.vector_store %arg13[%c0_75, %c1024], %80 {strides = array<i32>} : memref<2x4096xf32, #tpu.memory_space<vmem>>, vector<2x256xf32>,
    %82 = vector.extract_strided_slice %66 {offsets = [0, 5, 0], sizes = [2, 1, 256], strides = [1, 1, 1]} : vector<2x16x256xf32> to vector<2x1x256xf32>
    %83 = vector.shape_cast %82 : vector<2x1x256xf32> to vector<2x256xf32>
    %c0_76 = arith.constant 0 : index
    %c1280 = arith.constant 1280 : index
    %84 = vector.load %arg13[%c0_76, %c1280] : memref<2x4096xf32, #tpu.memory_space<vmem>>, vector<2x256xf32>
    tpu.vector_store %arg13[%c0_76, %c1280], %83 {strides = array<i32>} : memref<2x4096xf32, #tpu.memory_space<vmem>>, vector<2x256xf32>,
    %85 = vector.extract_strided_slice %66 {offsets = [0, 6, 0], sizes = [2, 1, 256], strides = [1, 1, 1]} : vector<2x16x256xf32> to vector<2x1x256xf32>
    %86 = vector.shape_cast %85 : vector<2x1x256xf32> to vector<2x256xf32>
    %c0_77 = arith.constant 0 : index
    %c1536 = arith.constant 1536 : index
    %87 = vector.load %arg13[%c0_77, %c1536] : memref<2x4096xf32, #tpu.memory_space<vmem>>, vector<2x256xf32>
    tpu.vector_store %arg13[%c0_77, %c1536], %86 {strides = array<i32>} : memref<2x4096xf32, #tpu.memory_space<vmem>>, vector<2x256xf32>,
    %88 = vector.extract_strided_slice %66 {offsets = [0, 7, 0], sizes = [2, 1, 256], strides = [1, 1, 1]} : vector<2x16x256xf32> to vector<2x1x256xf32>
    %89 = vector.shape_cast %88 : vector<2x1x256xf32> to vector<2x256xf32>
    %c0_78 = arith.constant 0 : index
    %c1792 = arith.constant 1792 : index
    %90 = vector.load %arg13[%c0_78, %c1792] : memref<2x4096xf32, #tpu.memory_space<vmem>>, vector<2x256xf32>
    tpu.vector_store %arg13[%c0_78, %c1792], %89 {strides = array<i32>} : memref<2x4096xf32, #tpu.memory_space<vmem>>, vector<2x256xf32>,
    %91 = vector.extract_strided_slice %66 {offsets = [0, 8, 0], sizes = [2, 1, 256], strides = [1, 1, 1]} : vector<2x16x256xf32> to vector<2x1x256xf32>
    %92 = vector.shape_cast %91 : vector<2x1x256xf32> to vector<2x256xf32>
    %c0_79 = arith.constant 0 : index
    %c2048 = arith.constant 2048 : index
    %93 = vector.load %arg13[%c0_79, %c2048] : memref<2x4096xf32, #tpu.memory_space<vmem>>, vector<2x256xf32>
    tpu.vector_store %arg13[%c0_79, %c2048], %92 {strides = array<i32>} : memref<2x4096xf32, #tpu.memory_space<vmem>>, vector<2x256xf32>,
    %94 = vector.extract_strided_slice %66 {offsets = [0, 9, 0], sizes = [2, 1, 256], strides = [1, 1, 1]} : vector<2x16x256xf32> to vector<2x1x256xf32>
    %95 = vector.shape_cast %94 : vector<2x1x256xf32> to vector<2x256xf32>
    %c0_80 = arith.constant 0 : index
    %c2304 = arith.constant 2304 : index
    %96 = vector.load %arg13[%c0_80, %c2304] : memref<2x4096xf32, #tpu.memory_space<vmem>>, vector<2x256xf32>
    tpu.vector_store %arg13[%c0_80, %c2304], %95 {strides = array<i32>} : memref<2x4096xf32, #tpu.memory_space<vmem>>, vector<2x256xf32>,
    %97 = vector.extract_strided_slice %66 {offsets = [0, 10, 0], sizes = [2, 1, 256], strides = [1, 1, 1]} : vector<2x16x256xf32> to vector<2x1x256xf32>
    %98 = vector.shape_cast %97 : vector<2x1x256xf32> to vector<2x256xf32>
    %c0_81 = arith.constant 0 : index
    %c2560 = arith.constant 2560 : index
    %99 = vector.load %arg13[%c0_81, %c2560] : memref<2x4096xf32, #tpu.memory_space<vmem>>, vector<2x256xf32>
    tpu.vector_store %arg13[%c0_81, %c2560], %98 {strides = array<i32>} : memref<2x4096xf32, #tpu.memory_space<vmem>>, vector<2x256xf32>,
    %100 = vector.extract_strided_slice %66 {offsets = [0, 11, 0], sizes = [2, 1, 256], strides = [1, 1, 1]} : vector<2x16x256xf32> to vector<2x1x256xf32>
    %101 = vector.shape_cast %100 : vector<2x1x256xf32> to vector<2x256xf32>
    %c0_82 = arith.constant 0 : index
    %c2816 = arith.constant 2816 : index
    %102 = vector.load %arg13[%c0_82, %c2816] : memref<2x4096xf32, #tpu.memory_space<vmem>>, vector<2x256xf32>
    tpu.vector_store %arg13[%c0_82, %c2816], %101 {strides = array<i32>} : memref<2x4096xf32, #tpu.memory_space<vmem>>, vector<2x256xf32>,
    %103 = vector.extract_strided_slice %66 {offsets = [0, 12, 0], sizes = [2, 1, 256], strides = [1, 1, 1]} : vector<2x16x256xf32> to vector<2x1x256xf32>
    %104 = vector.shape_cast %103 : vector<2x1x256xf32> to vector<2x256xf32>
    %c0_83 = arith.constant 0 : index
    %c3072 = arith.constant 3072 : index
    %105 = vector.load %arg13[%c0_83, %c3072] : memref<2x4096xf32, #tpu.memory_space<vmem>>, vector<2x256xf32>
    tpu.vector_store %arg13[%c0_83, %c3072], %104 {strides = array<i32>} : memref<2x4096xf32, #tpu.memory_space<vmem>>, vector<2x256xf32>,
    %106 = vector.extract_strided_slice %66 {offsets = [0, 13, 0], sizes = [2, 1, 256], strides = [1, 1, 1]} : vector<2x16x256xf32> to vector<2x1x256xf32>
    %107 = vector.shape_cast %106 : vector<2x1x256xf32> to vector<2x256xf32>
    %c0_84 = arith.constant 0 : index
    %c3328 = arith.constant 3328 : index
    %108 = vector.load %arg13[%c0_84, %c3328] : memref<2x4096xf32, #tpu.memory_space<vmem>>, vector<2x256xf32>
    tpu.vector_store %arg13[%c0_84, %c3328], %107 {strides = array<i32>} : memref<2x4096xf32, #tpu.memory_space<vmem>>, vector<2x256xf32>,
    %109 = vector.extract_strided_slice %66 {offsets = [0, 14, 0], sizes = [2, 1, 256], strides = [1, 1, 1]} : vector<2x16x256xf32> to vector<2x1x256xf32>
    %110 = vector.shape_cast %109 : vector<2x1x256xf32> to vector<2x256xf32>
    %c0_85 = arith.constant 0 : index
    %c3584 = arith.constant 3584 : index
    %111 = vector.load %arg13[%c0_85, %c3584] : memref<2x4096xf32, #tpu.memory_space<vmem>>, vector<2x256xf32>
    tpu.vector_store %arg13[%c0_85, %c3584], %110 {strides = array<i32>} : memref<2x4096xf32, #tpu.memory_space<vmem>>, vector<2x256xf32>,
    %112 = vector.extract_strided_slice %66 {offsets = [0, 15, 0], sizes = [2, 1, 256], strides = [1, 1, 1]} : vector<2x16x256xf32> to vector<2x1x256xf32>
    %113 = vector.shape_cast %112 : vector<2x1x256xf32> to vector<2x256xf32>
    %c0_86 = arith.constant 0 : index
    %c3840 = arith.constant 3840 : index
    %114 = vector.load %arg13[%c0_86, %c3840] : memref<2x4096xf32, #tpu.memory_space<vmem>>, vector<2x256xf32>
    tpu.vector_store %arg13[%c0_86, %c3840], %113 {strides = array<i32>} : memref<2x4096xf32, #tpu.memory_space<vmem>>, vector<2x256xf32>,
    %c0_87 = arith.constant 0 : index
    %c0_88 = arith.constant 0 : index
    %115 = vector.load %arg13[%c0_87, %c0_88] : memref<2x4096xf32, #tpu.memory_space<vmem>>, vector<2x4096xf32>
    %116 = arith.truncf %115 : vector<2x4096xf32> to vector<2x4096xbf16>
    %c0_89 = arith.constant 0 : index
    %c0_90 = arith.constant 0 : index
    %117 = vector.load %arg6[%c0_89, %c0_90] : memref<4096x32xbf16, #tpu.memory_space<vmem>>, vector<4096x32xbf16>
    %cst_91 = arith.constant dense<0.000000e+00> : vector<2x32xf32>
    %118 = tpu.matmul %116, %117, %cst_91 {dimension_numbers = #tpu.dot_dimension_numbers<[1], [0], [0], [1], [0, 0, 1, 1], [], []>} : vector<2x4096xbf16>, vector<4096x32xbf16>, vector<2x32xf32> -> vector<2x32xf32>
    %c0_92 = arith.constant 0 : index
    %c0_93 = arith.constant 0 : index
    %119 = vector.load %arg7[%c0_92, %c0_93] : memref<1x32xf32, #tpu.memory_space<vmem>>, vector<1x32xf32>
    %120 = vector.broadcast %119 : vector<1x32xf32> to vector<2x32xf32>
    %121 = arith.addf %118, %120 : vector<2x32xf32>
    %cst_94 = arith.constant 0.000000e+00 : f32
    %122 = vector.broadcast %cst_94 : f32 to vector<2x32xf32>
    %123 = arith.maximumf %121, %122 : vector<2x32xf32>
    %124 = arith.truncf %123 : vector<2x32xf32> to vector<2x32xbf16>
    %c0_95 = arith.constant 0 : index
    %c0_96 = arith.constant 0 : index
    %125 = vector.load %arg8[%c0_95, %c0_96] : memref<32x10xbf16, #tpu.memory_space<vmem>>, vector<32x10xbf16>
    %cst_97 = arith.constant dense<0.000000e+00> : vector<2x10xf32>
    %126 = tpu.matmul %124, %125, %cst_97 {dimension_numbers = #tpu.dot_dimension_numbers<[1], [0], [0], [1], [0, 0, 1, 1], [], []>} : vector<2x32xbf16>, vector<32x10xbf16>, vector<2x10xf32> -> vector<2x10xf32>
    %c0_98 = arith.constant 0 : index
    %c0_99 = arith.constant 0 : index
    %127 = vector.load %arg9[%c0_98, %c0_99] : memref<1x10xf32, #tpu.memory_space<vmem>>, vector<1x10xf32>
    %128 = vector.broadcast %127 : vector<1x10xf32> to vector<2x10xf32>
    %129 = arith.addf %126, %128 : vector<2x10xf32>
    %c0_100 = arith.constant 0 : index
    %c0_101 = arith.constant 0 : index
    %130 = vector.load %arg10[%c0_100, %c0_101] : memref<2x10xf32, #tpu.memory_space<vmem>>, vector<2x10xf32>
    tpu.vector_store %arg10[%c0_100, %c0_101], %129 {strides = array<i32>} : memref<2x10xf32, #tpu.memory_space<vmem>>, vector<2x10xf32>,
    return
  }
  func.func @transform_0(%arg0: i32) -> (i32, i32, i32) {
    %c0_i32 = arith.constant 0 : i32
    %c0_i32_0 = arith.constant 0 : i32
    %c0_i32_1 = arith.constant 0 : i32
    %c0_i32_2 = arith.constant 0 : i32
    return %c0_i32, %c0_i32_0, %c0_i32_1 : i32, i32, i32
  }
  func.func @transform_1(%arg0: i32) -> (i32, i32, i32) {
    %c0_i32 = arith.constant 0 : i32
    %c0_i32_0 = arith.constant 0 : i32
    %c0_i32_1 = arith.constant 0 : i32
    %c0_i32_2 = arith.constant 0 : i32
    return %c0_i32, %c0_i32_0, %c0_i32_1 : i32, i32, i32
  }
  func.func @transform_2(%arg0: i32) -> (i32, i32) {
    %c0_i32 = arith.constant 0 : i32
    %c0_i32_0 = arith.constant 0 : i32
    %c0_i32_1 = arith.constant 0 : i32
    return %c0_i32, %c0_i32_0 : i32, i32
  }
  func.func @transform_3(%arg0: i32) -> (i32, i32, i32) {
    %c0_i32 = arith.constant 0 : i32
    %c0_i32_0 = arith.constant 0 : i32
    %c0_i32_1 = arith.constant 0 : i32
    %c0_i32_2 = arith.constant 0 : i32
    return %c0_i32, %c0_i32_0, %c0_i32_1 : i32, i32, i32
  }
  func.func @transform_4(%arg0: i32) -> (i32, i32) {
    %c0_i32 = arith.constant 0 : i32
    %c0_i32_0 = arith.constant 0 : i32
    %c0_i32_1 = arith.constant 0 : i32
    return %c0_i32, %c0_i32_0 : i32, i32
  }
  func.func @transform_5(%arg0: i32) -> (i32, i32) {
    %c0_i32 = arith.constant 0 : i32
    %c0_i32_0 = arith.constant 0 : i32
    %c0_i32_1 = arith.constant 0 : i32
    return %c0_i32, %c0_i32_0 : i32, i32
  }
  func.func @transform_6(%arg0: i32) -> (i32, i32) {
    %c0_i32 = arith.constant 0 : i32
    %c0_i32_0 = arith.constant 0 : i32
    %c0_i32_1 = arith.constant 0 : i32
    return %c0_i32, %c0_i32_0 : i32, i32
  }
  func.func @transform_7(%arg0: i32) -> (i32, i32) {
    %c0_i32 = arith.constant 0 : i32
    %c0_i32_0 = arith.constant 0 : i32
    %c0_i32_1 = arith.constant 0 : i32
    return %c0_i32, %c0_i32_0 : i32, i32
  }
  func.func @transform_8(%arg0: i32) -> (i32, i32) {
    %c0_i32 = arith.constant 0 : i32
    %c0_i32_0 = arith.constant 0 : i32
    %c0_i32_1 = arith.constant 0 : i32
    return %c0_i32, %c0_i32_0 : i32, i32
  }
  func.func @transform_9(%arg0: i32) -> (i32, i32) {
    %c0_i32 = arith.constant 0 : i32
    %c0_i32_0 = arith.constant 0 : i32
    %c0_i32_1 = arith.constant 0 : i32
    return %c0_i32, %c0_i32_0 : i32, i32
  }
}

</mosaic_0001>

<bundles_post_ra>
// kernel: toy_network_forward.1
= control target key start
LH: loop header
LB: loop body
LE: loop exit
PB: predicated region body
PF: predicated region fallthrough
CT: control target
= control target key end

     0   :  { %vm34_vm0 = vcmask 516096   ;;  %vm43_vm1 = vcmask 523264   ;;  %v5281_v3 = vmov 0.0   ;;  %v5282_v52 = vmov 0   ;;  %s6592_s0 = inlined_call_operand.vmem [shape: f32[2,16,64], index: 0, kind: input, shape index: {}]   ;;  %s6593_s1 = inlined_call_operand.vmem [shape: bf16[3,64,128], index: 1, kind: input, shape index: {}]   ;;  %s6594_s2 = inlined_call_operand.vmem [shape: f32[1,128], index: 2, kind: input, shape index: {}]   ;;  %s6595_s3 = inlined_call_operand.vmem [shape: bf16[3,128,256], index: 3, kind: input, shape index: {}]   ;;  %s6596_s4 = inlined_call_operand.vmem [shape: f32[1,256], index: 4, kind: input, shape index: {}]   ;;  %s6597_s5 = inlined_call_operand.vmem [shape: bf16[4096,32], index: 5, kind: input, shape index: {}]   ;;  %s6598_s6 = inlined_call_operand.vmem [shape: f32[1,32], index: 6, kind: input, shape index: {}]   ;;  %s6599_s7 = inlined_call_operand.vmem [shape: bf16[32,10], index: 7, kind: input, shape index: {}]   ;;  %s6600_s8 = inlined_call_operand.vmem [shape: f32[1,10], index: 8, kind: input, shape index: {}]   ;;  %s6601_s9 = inlined_call_operand.hbm [shape: f32[2,10], index: 9, kind: output, shape index: {}]  }
   0x1   :  { %v4907_v0 = vld [vmem:[%s6593_s1 + $0x20] sm:$0xff]   ;;  %v4908_v1 = vld [vmem:[%s6593_s1 + $0x28] sm:$0xff]   ;;  %v4909_v2 = vld [vmem:[%s6593_s1 + $0x30] sm:$0xff]   ;;  %35 = vst.msk [vmem:[#allocation2] sm:$0x1] %vm34_vm0, %v5281_v3  ;;  %513 = vmatprep.mubr.bf16.mxu1 %v5282_v52 }
   0x2   :  { %4834 = vmatprep.subr.bf16.mxu0 %v4907_v0  ;;  %36 = vst.msk [vmem:[#allocation2 + $0x18] sm:$0x1] %vm34_vm0, %v5281_v3  ;;  %37 = vst.msk [vmem:[#allocation2 + $0x11] sm:$0x1] %vm34_vm0, %v5281_v3  ;;  %v39_v4 = vld [vmem:[%s6592_s0] sm:$0xff]  ;;  %v40_v5 = vld [vmem:[%s6592_s0 + $0x8] sm:$0xff] }
   0x3   :  { %4835 = vmatpush3.bf16.msra.mxu0 %v4907_v0  ;;  %38 = vst.msk [vmem:[#allocation2 + $0x29] sm:$0x1] %vm34_vm0, %v5281_v3  ;;  %348 = vst [vmem:[#allocation3] sm:$0x1] %v5281_v3  ;;  %v41_v6 = vld [vmem:[%s6592_s0 + $0x10] sm:$0xff]  ;;  %v42_v7 = vld [vmem:[%s6592_s0 + $0x18] sm:$0xff] }
   0x4   :  { %349 = vst [vmem:[#allocation3 + $0x18] sm:$0x1] %v5281_v3  ;;  %350 = vst [vmem:[#allocation3 + $0x11] sm:$0x1] %v5281_v3  ;;  %4836 = vmatprep.subr.bf16.mxu0 %v4908_v1  ;;  %v4910_v8 = vld [vmem:[%s6593_s1 + $0x38] sm:$0xff]   ;;  %v4911_v9 = vld [vmem:[%s6593_s1] sm:$0xff]  }
   0x5   :  { %351 = vst [vmem:[#allocation3 + $0x29] sm:$0x1] %v5281_v3  ;;  %44 = vst.msk [vmem:[#allocation2 + $0x1] sm:$0xff] %vm43_vm1, %v39_v4  ;;  %v4912_v19 = vld [vmem:[%s6593_s1 + $0x8] sm:$0xff]   ;;  %v4922_v22 = vld [vmem:[%s6595_s3 + $0x94] ss:$8 sps:$4 sm:$0xff]  }
   0x6   :  { %45 = vst.msk [vmem:[#allocation2 + $0x9] sm:$0xff] %vm43_vm1, %v40_v5  ;;  %46 = vst.msk [vmem:[#allocation2 + $0x19] sm:$0xff] %vm43_vm1, %v41_v6  ;;  %v4919_v20 = vld [vmem:[%s6595_s3 + $0x84] ss:$8 sps:$4 sm:$0xff]   ;;  %v4921_v21 = vld [vmem:[%s6595_s3 + $0x80] ss:$8 sps:$4 sm:$0xff]  }
   0x7   :  { %4837 = vmatpush3.bf16.msra.mxu0 %v4908_v1  ;;  %47 = vst.msk [vmem:[#allocation2 + $0x21] sm:$0xff] %vm43_vm1, %v42_v7  ;;  %v4913_v23 = vld [vmem:[%s6593_s1 + $0x10] sm:$0xff]   ;;  %481 = vmatprep.subr.bf16.mxu1 %v4919_v20  ;;  %v4914_v25 = vld [vmem:[%s6593_s1 + $0x18] sm:$0xff]   ;;  %v4925_v26 = vld [vmem:[%s6595_s3 + $0xa4] ss:$8 sps:$4 sm:$0xff]  }
   0x8   :  { %4838 = vmatprep.subr.bf16.mxu0 %v4909_v2  ;;  %482 = vmatpush1.bf16.msra.mxu1 %v4921_v21  ;;  %v4924_v24 = vld [vmem:[%s6595_s3 + $0x90] ss:$8 sps:$4 sm:$0xff]   ;;  %v4927_v27 = vld [vmem:[%s6595_s3 + $0xa0] ss:$8 sps:$4 sm:$0xff]   ;;  %v4928_v28 = vld [vmem:[%s6595_s3 + $0xb4] ss:$8 sps:$4 sm:$0xff]  }
   0x9   :  { %483 = vmatprep.subr.bf16.mxu1 %v4922_v22  ;;  %v4915_v31 = vld [vmem:[%s6593_s1 + $0x40] sm:$0xff]   ;;  %v4930_v34 = vld [vmem:[%s6595_s3 + $0xb0] ss:$8 sps:$4 sm:$0xff]   ;;  %v4916_v36 = vld [vmem:[%s6593_s1 + $0x48] sm:$0xff]  }
   0xa   :  { %v4917_v38 = vld [vmem:[%s6593_s1 + $0x50] sm:$0xff]   ;;  %v4918_v39 = vld [vmem:[%s6593_s1 + $0x58] sm:$0xff]   ;;  %v4931_v43 = vld [vmem:[%s6595_s3 + $0xc4] ss:$8 sps:$4 sm:$0xff]  }
   0xb   :  { %4839 = vmatpush3.bf16.msra.mxu0 %v4909_v2  ;;  %v4933_v44 = vld [vmem:[%s6595_s3 + $0xc0] ss:$8 sps:$4 sm:$0xff]   ;;  %v4934_v45 = vld [vmem:[%s6595_s3 + $0xd4] ss:$8 sps:$4 sm:$0xff]   ;;  %v4936_v46 = vld [vmem:[%s6595_s3 + $0xd0] ss:$8 sps:$4 sm:$0xff]  }
   0xc   :  { %4840 = vmatprep.subr.bf16.mxu0 %v4910_v8  ;;  %v62_v10 = vld [vmem:[#allocation2 + $0x1] sm:$0xff]  ;;  %484 = vmatpush1.bf16.msra.mxu1 %v4924_v24  ;;  %v4940_v49 = vld [vmem:[%s6595_s3 + $0xf4] ss:$8 sps:$4 sm:$0xff]   ;;  %v4942_v50 = vld [vmem:[%s6595_s3 + $0xf0] ss:$8 sps:$4 sm:$0xff]  }
   0xd   :  { %v63_v11 = vld [vmem:[#allocation2 + $0x9] sm:$0xff]  ;;  %v48_v12 = vld [vmem:[#allocation2] sm:$0xff]  ;;  %v50_v29 = vld [vmem:[#allocation2 + $0x18] sm:$0xff]  ;;  %485 = vmatprep.subr.bf16.mxu1 %v4925_v26 }
   0xe   :  { %v66_v13 = vpack.c.bf16 %v63_v11, %v62_v10  ;;  %v64_v14 = vld [vmem:[#allocation2 + $0x19] sm:$0xff]  ;;  %v49_v15 = vld [vmem:[#allocation2 + $0x8] sm:$0xff] }
   0xf   :  { %v65_v16 = vld [vmem:[#allocation2 + $0x21] sm:$0xff]  ;;  %4841 = vmatpush3.bf16.msra.mxu0 %v4910_v8  ;;  %v52_v18 = vpack.c.bf16 %v49_v15, %v48_v12  ;;  %v236_v33 = vld [vmem:[#allocation2 + $0xa] sm:$0xff] }
  0x10   :  { %4842 = vmatprep.mubr.msk.bf16.mxu0 %vm43_vm1, %v66_v13  ;;  %v67_v17 = vpack.c.bf16 %v65_v16, %v64_v14  ;;  %4846 = vmatprep.subr.bf16.mxu0 %v4911_v9  ;;  %v51_v30 = vld [vmem:[#allocation2 + $0x20] sm:$0xff] }
  0x11   :  { %v235_v32 = vld [vmem:[#allocation2 + $0x2] sm:$0xff]  ;;  %486 = vmatpush1.bf16.msra.mxu1 %v4927_v27  ;;  %v53_v35 = vpack.c.bf16 %v51_v30, %v50_v29  ;;  %v237_v40 = vld [vmem:[#allocation2 + $0x1a] sm:$0xff] }
  0x12   :  { %4843 = vmatmul.mubr.msk.bf16.vlgmr.msra.gmra.mrb[0].mxu0 %vm43_vm1, %v67_v17  ;;  %487 = vmatprep.subr.bf16.mxu1 %v4928_v28  ;;  %v239_v37 = vpack.c.bf16 %v236_v33, %v235_v32  ;;  %v238_v41 = vld [vmem:[#allocation2 + $0x22] sm:$0xff] }
  0x13   :  { %4847 = vmatpush3.bf16.msra.mxu0 %v4911_v9  ;;  %4854 = vmatprep.mubr.msk.bf16.mxu0 %vm43_vm1, %v52_v18  ;;  %v240_v42 = vpack.c.bf16 %v238_v41, %v237_v40  ;;  %v4937_v47 = vld [vmem:[%s6595_s3 + $0xe4] ss:$8 sps:$4 sm:$0xff]   ;;  %v4939_v48 = vld [vmem:[%s6595_s3 + $0xe0] ss:$8 sps:$4 sm:$0xff]  }
  0x14   :  { %4848 = vmatprep.subr.bf16.mxu0 %v4912_v19  ;;  %v4945_v51 = vld [vmem:[%s6595_s3 + $0x4] ss:$8 sps:$4 sm:$0xff]  }
  0x15   :  { %488 = vmatpush1.bf16.msra.mxu1 %v4930_v34 }
  0x16   :  { %489 = vmatprep.subr.bf16.mxu1 %v4931_v43 }
  0x17   :  { %4849 = vmatpush3.bf16.msra.mxu0 %v4912_v19 }
  0x18   :  { %4850 = vmatprep.subr.bf16.mxu0 %v4913_v23 }
  0x19   :  { %490 = vmatpush1.bf16.msra.mxu1 %v4933_v44 }
  0x1a   :  { %491 = vmatprep.subr.bf16.mxu1 %v4934_v45 }
  0x1b   :  { %4851 = vmatpush3.bf16.msra.mxu0 %v4913_v23 }
  0x1c   :  { %4852 = vmatprep.subr.bf16.mxu0 %v4914_v25 }
  0x1d   :  { %492 = vmatpush1.bf16.msra.mxu1 %v4936_v46 }
  0x1e   :  { %493 = vmatprep.subr.bf16.mxu1 %v4937_v47 }
  0x1f   :  { %4853 = vmatpush3.bf16.msra.mxu0 %v4914_v25 }
  0x20   :  { %4858 = vmatprep.subr.bf16.mxu0 %v4915_v31 }
  0x21   :  { %494 = vmatpush1.bf16.msra.mxu1 %v4939_v48 }
  0x22   :  { %4855 = vmatmul.mubr.msk.bf16.vlgmr.msra.gmra.mrb[0].mxu0 %vm43_vm1, %v53_v35  ;;  %495 = vmatprep.subr.bf16.mxu1 %v4940_v49 }
  0x23   :  { %4859 = vmatpush3.bf16.msra.mxu0 %v4915_v31  ;;  %4866 = vmatprep.mubr.msk.bf16.mxu0 %vm43_vm1, %v239_v37 }
  0x24   :  { %4860 = vmatprep.subr.bf16.mxu0 %v4916_v36 }
  0x25   :  { %496 = vmatpush1.bf16.msra.mxu1 %v4942_v50 }
  0x26   :  { %614 = vmatprep.subr.bf16.mxu1 %v4945_v51 }
  0x27   :  { %4861 = vmatpush3.bf16.msra.mxu0 %v4916_v36 }
  0x28   :  { %4862 = vmatprep.subr.bf16.mxu0 %v4917_v38 }
  0x2b   :  { %4863 = vmatpush3.bf16.msra.mxu0 %v4917_v38 }
  0x2c   :  { %4864 = vmatprep.subr.bf16.mxu0 %v4918_v39 }
  0x2f   :  { %4865 = vmatpush3.bf16.msra.mxu0 %v4918_v39 }
  0x32   :  { %4867 = vmatmul.mubr.msk.bf16.vlgmr.msra.gmra.mrb[0].mxu0 %vm43_vm1, %v240_v42 }
  0x33   :  { %14 = vsyncpa [#allocation6], 0  ;;  %v4119_v53 = vld [vmem:[%s6594_s2] ss:$0 sm:$0xff]  ;;  %v4948_v6 = vld [vmem:[%s6595_s3 + $0x14] ss:$8 sps:$4 sm:$0xff]  }
  0x34   :  { %v4943_v2 = vld [vmem:[%s6595_s3] ss:$8 sps:$4 sm:$0xff]   ;;  %v4946_v7 = vld [vmem:[%s6595_s3 + $0x10] ss:$8 sps:$4 sm:$0xff]   ;;  %v4951_v8 = vld [vmem:[%s6595_s3 + $0x24] ss:$8 sps:$4 sm:$0xff]  }
  0x35   :  { %v4949_v9 = vld [vmem:[%s6595_s3 + $0x20] ss:$8 sps:$4 sm:$0xff]   ;;  %v4954_v10 = vld [vmem:[%s6595_s3 + $0x34] ss:$8 sps:$4 sm:$0xff]   ;;  %v4952_v11 = vld [vmem:[%s6595_s3 + $0x30] ss:$8 sps:$4 sm:$0xff]  }
  0x36   :  { %v4957_v12 = vld [vmem:[%s6595_s3 + $0x44] ss:$8 sps:$4 sm:$0xff]   ;;  %v4955_v13 = vld [vmem:[%s6595_s3 + $0x40] ss:$8 sps:$4 sm:$0xff]   ;;  %v4960_v14 = vld [vmem:[%s6595_s3 + $0x54] ss:$8 sps:$4 sm:$0xff]  }
  0x37   :  { %v4958_v15 = vld [vmem:[%s6595_s3 + $0x50] ss:$8 sps:$4 sm:$0xff]   ;;  %v4963_v16 = vld [vmem:[%s6595_s3 + $0x64] ss:$8 sps:$4 sm:$0xff]   ;;  %v4961_v17 = vld [vmem:[%s6595_s3 + $0x60] ss:$8 sps:$4 sm:$0xff]  }
  0x38   :  { %v4966_v18 = vld [vmem:[%s6595_s3 + $0x74] ss:$8 sps:$4 sm:$0xff]   ;;  %v4964_v19 = vld [vmem:[%s6595_s3 + $0x70] ss:$8 sps:$4 sm:$0xff]   ;;  %v4969_v20 = vld [vmem:[%s6595_s3 + $0x104] ss:$8 sps:$4 sm:$0xff]  }
  0x39   :  { %v4967_v23 = vld [vmem:[%s6595_s3 + $0x100] ss:$8 sps:$4 sm:$0xff]   ;;  %v4972_v25 = vld [vmem:[%s6595_s3 + $0x114] ss:$8 sps:$4 sm:$0xff]   ;;  %v4970_v26 = vld [vmem:[%s6595_s3 + $0x110] ss:$8 sps:$4 sm:$0xff]  }
  0x3a   :  { %v4975_v27 = vld [vmem:[%s6595_s3 + $0x124] ss:$8 sps:$4 sm:$0xff]   ;;  %v4973_v30 = vld [vmem:[%s6595_s3 + $0x120] ss:$8 sps:$4 sm:$0xff]   ;;  %v4978_v32 = vld [vmem:[%s6595_s3 + $0x134] ss:$8 sps:$4 sm:$0xff]  }
  0x3b   :  { %v4976_v33 = vld [vmem:[%s6595_s3 + $0x130] ss:$8 sps:$4 sm:$0xff]   ;;  %v4981_v34 = vld [vmem:[%s6595_s3 + $0x144] ss:$8 sps:$4 sm:$0xff]   ;;  %v4979_v35 = vld [vmem:[%s6595_s3 + $0x140] ss:$8 sps:$4 sm:$0xff]  }
  0x3c   :  { %v4984_v36 = vld [vmem:[%s6595_s3 + $0x154] ss:$8 sps:$4 sm:$0xff]   ;;  %v4982_v37 = vld [vmem:[%s6595_s3 + $0x150] ss:$8 sps:$4 sm:$0xff]   ;;  %v4987_v38 = vld [vmem:[%s6595_s3 + $0x164] ss:$8 sps:$4 sm:$0xff]  }
  0x3d   :  { %v4985_v39 = vld [vmem:[%s6595_s3 + $0x160] ss:$8 sps:$4 sm:$0xff]   ;;  %v4990_v40 = vld [vmem:[%s6595_s3 + $0x174] ss:$8 sps:$4 sm:$0xff]   ;;  %v4988_v41 = vld [vmem:[%s6595_s3 + $0x170] ss:$8 sps:$4 sm:$0xff]  }
  0x3e   :  { %v4991_v48 = vld [vmem:[%s6597_s5 + $0x40] sm:$0xff]   ;;  %vm884_vm2 = vcmask 1041409   ;;  %vm886_vm3 = vcmask 1043459   ;;  %vm888_vm4 = vcmask 1045509   ;;  %vm890_vm5 = vcmask 1047559   ;;  %s5285_s23 = smov [#allocation5]  }
  0x3f   :  { %v4992_v49 = vld [vmem:[%s6597_s5] sm:$0xff]   ;;  %4479 = vmatprep.subr.bf16.mxu0 %v4991_v48  ;;  %vm5284_vm6 = vmmov 0   ;;  %vm4025_vm7 = vcmask 261120   ;;  %s4077_s24 = sshll.u32 %s5285_s23, 4  ;;  %vm4069_vm8 = vcmask 74752   ;;  %s4078_s24 = int_to_ptr.vmem [resolvable:$true] %s4077_s24 }
  0x40   :  { %v4993_v50 = vld [vmem:[%s6597_s5 + $0x140] sm:$0xff]   ;;  %4480 = vmatpush3.bf16.msra.mxu0 %v4992_v49  ;;  %s5257_s25 = scalar_lea.vmem %s4078_s24, 32  ;;  %p5262_p1 = scmp.lt.s32.totalorder %s4078_s24, %s4078_s24 }
  0x41   :  { %v4994_v51 = vld [vmem:[%s6597_s5 + $0x100] sm:$0xff]   ;;  %p5258_p0 = scmp.ne.s32.totalorder %s4078_s24, %s5257_s25  ;;  %p5263_p2 = scmp.lt.s32.totalorder %s5257_s25, %s5257_s25 }
  0x43   :  { %p5264_p3 = por %p5263_p2, %p5262_p1 }
  0x45   :  { %p5265_p4 = pnand %p5264_p3, %p5258_p0 }
 0x105   :  { %v4868_v54 = vpop.f32.mrb[0].mxu0 }
 0x106   :  { %v342_v55 = vadd.f32 %v4868_v54, %v4119_v53  ;;  %v314_v56 = vpop.f32.mrb[1].mxu0  ;;  %v4997_v54 = vld [vmem:[%s6597_s5 + $0x148] sm:$0xff]  }
 0x107   :  { %v340_v57 = vadd.f32 %v4119_v53, %v314_v56  ;;  %v4869_v58 = vpop.f32.mrb[2].mxu0  ;;  %v4999_v56 = vld [vmem:[%s6597_s5 + $0x50] sm:$0xff]  }
 0x108   :  { %v346_v59 = vmax.f32 %v342_v55, 0.0  ;;  %v343_v60 = vadd.f32 %v4869_v58, %v4119_v53  ;;  %v317_v61 = vpop.f32.mrb[3].mxu0  ;;  %v4998_v55 = vld [vmem:[%s6597_s5 + $0x108] sm:$0xff]   ;;  %v5001_v58 = vld [vmem:[%s6597_s5 + $0x150] sm:$0xff]  }
 0x109   :  { %v344_v62 = vmax.f32 %v340_v57, 0.0  ;;  %v341_v63 = vadd.f32 %v4119_v53, %v317_v61  ;;  %v4996_v53 = vld [vmem:[%s6597_s5 + $0x8] sm:$0xff]   ;;  %v5000_v57 = vld [vmem:[%s6597_s5 + $0x10] sm:$0xff]   ;;  %v5004_v61 = vld [vmem:[%s6597_s5 + $0x18] sm:$0xff]  }
 0x10a   :  { %354 = vst [vmem:[#allocation3 + $0x19] sm:$0xff] %v346_v59  ;;  %v347_v0 = vmax.f32 %v343_v60, 0.0  ;;  %v5003_v60 = vld [vmem:[%s6597_s5 + $0x58] sm:$0xff]  }
 0x10b   :  { %352 = vst [vmem:[#allocation3 + $0x1] sm:$0xff] %v344_v62  ;;  %v345_v1 = vmax.f32 %v341_v63, 0.0  ;;  %v5006_v63 = vld [vmem:[%s6597_s5 + $0x118] sm:$0xff]  }
 0x10c   :  { %355 = vst [vmem:[#allocation3 + $0x21] sm:$0xff] %v347_v0  ;;  %v383_v4 = vpack.c.bf16 %v347_v0, %v346_v59  ;;  %v5002_v59 = vld [vmem:[%s6597_s5 + $0x110] sm:$0xff]   ;;  %v5007_v0 = vld [vmem:[%s6597_s5 + $0x60] sm:$0xff]  }
 0x10d   :  { %353 = vst [vmem:[#allocation3 + $0x9] sm:$0xff] %v345_v1  ;;  %v382_v5 = vpack.c.bf16 %v345_v1, %v344_v62  ;;  %v5005_v62 = vld [vmem:[%s6597_s5 + $0x158] sm:$0xff]   ;;  %v5008_v1 = vld [vmem:[%s6597_s5 + $0x20] sm:$0xff]  }
 0x10f   :  { %514 = vmatmul.mubr.bf16.vlgmr.msra.gmra.mrb[0].mxu1 %v382_v5  ;;  %v5011_v5 = vld [vmem:[%s6597_s5 + $0x68] sm:$0xff]  }
 0x110   :  { %615 = vmatpush1.bf16.msra.mxu1 %v4943_v2  ;;  %523 = vmatprep.mubr.bf16.mxu1 %v5282_v52  ;;  %v5009_v2 = vld [vmem:[%s6597_s5 + $0x160] sm:$0xff]  }
 0x111   :  { %616 = vmatprep.subr.bf16.mxu1 %v4948_v6  ;;  %v358_v29 = vld [vmem:[#allocation3 + $0x18] sm:$0xff] }
 0x112   :  { %v356_v22 = vld [vmem:[#allocation3] sm:$0xff]  ;;  %v5012_v6 = vld [vmem:[%s6597_s5 + $0x28] sm:$0xff]  }
 0x113   :  { %v359_v28 = vld [vmem:[#allocation3 + $0x20] sm:$0xff] }
 0x114   :  { %617 = vmatpush1.bf16.msra.mxu1 %v4946_v7  ;;  %v357_v21 = vld [vmem:[#allocation3 + $0x8] sm:$0xff]  ;;  %v361_v31 = vpack.c.bf16 %v359_v28, %v358_v29  ;;  %v669_v45 = vld [vmem:[#allocation3 + $0x1a] sm:$0xff] }
 0x115   :  { %618 = vmatprep.subr.bf16.mxu1 %v4951_v8  ;;  %v360_v24 = vpack.c.bf16 %v357_v21, %v356_v22  ;;  %v667_v42 = vld [vmem:[#allocation3 + $0x2] sm:$0xff]  ;;  %v668_v43 = vld [vmem:[#allocation3 + $0xa] sm:$0xff]  ;;  %v5013_v7 = vld [vmem:[%s6597_s5 + $0x168] sm:$0xff]  }
 0x116   :  { %v671_v44 = vpack.c.bf16 %v668_v43, %v667_v42  ;;  %v670_v46 = vld [vmem:[#allocation3 + $0x22] sm:$0xff]  ;;  %v5014_v8 = vld [vmem:[%s6597_s5 + $0x128] sm:$0xff]   ;;  %v831_v22 = vld [vmem:[%s6596_s4] sm:$0x3] }
 0x117   :  { %524 = vmatmul.mubr.bf16.gmra.mrb[4].mxu1 %v383_v4  ;;  %v672_v47 = vpack.c.bf16 %v670_v46, %v669_v45  ;;  %v5010_v4 = vld [vmem:[%s6597_s5 + $0x120] sm:$0xff]  }
 0x118   :  { %619 = vmatpush1.bf16.msra.mxu1 %v4949_v9  ;;  %646 = vmatprep.mubr.bf16.mxu1 %v5282_v52  ;;  %v5015_v9 = vld [vmem:[%s6597_s5 + $0x70] sm:$0xff]  }
 0x119   :  { %620 = vmatprep.subr.bf16.mxu1 %v4954_v10  ;;  %v5016_v10 = vld [vmem:[%s6597_s5 + $0x30] sm:$0xff]  }
 0x11c   :  { %621 = vmatpush1.bf16.msra.mxu1 %v4952_v11  ;;  %v5017_v11 = vld [vmem:[%s6597_s5 + $0x170] sm:$0xff]  }
 0x11d   :  { %622 = vmatprep.subr.bf16.mxu1 %v4957_v12  ;;  %v5019_v12 = vld [vmem:[%s6597_s5 + $0x78] sm:$0xff]  }
 0x120   :  { %623 = vmatpush1.bf16.msra.mxu1 %v4955_v13  ;;  %v5018_v13 = vld [vmem:[%s6597_s5 + $0x130] sm:$0xff]  }
 0x121   :  { %624 = vmatprep.subr.bf16.mxu1 %v4960_v14  ;;  %v5021_v14 = vld [vmem:[%s6597_s5 + $0x178] sm:$0xff]  }
 0x124   :  { %625 = vmatpush1.bf16.msra.mxu1 %v4958_v15  ;;  %v5020_v15 = vld [vmem:[%s6597_s5 + $0x38] sm:$0xff]  }
 0x125   :  { %626 = vmatprep.subr.bf16.mxu1 %v4963_v16  ;;  %v5023_v16 = vld [vmem:[%s6597_s5 + $0xc0] sm:$0xff]  }
 0x128   :  { %627 = vmatpush1.bf16.msra.mxu1 %v4961_v17  ;;  %v5022_v17 = vld [vmem:[%s6597_s5 + $0x138] sm:$0xff]  }
 0x129   :  { %628 = vmatprep.subr.bf16.mxu1 %v4966_v18  ;;  %v5026_v18 = vld [vmem:[%s6597_s5 + $0x240] sm:$0xff]  }
 0x12c   :  { %629 = vmatpush1.bf16.msra.mxu1 %v4964_v19  ;;  %v833_v19 = vlaneseq }
 0x12d   :  { %770 = vmatprep.subr.bf16.mxu1 %v4969_v20 }
 0x12e   :  { %v834_v20 = vshrl.u32 %v833_v19, 7 }
 0x12f   :  { %647 = vmatmul.mubr.bf16.vlgmr.msra.gmra.mrb[0].mxu1 %v360_v24 }
 0x130   :  { %771 = vmatpush1.bf16.msra.mxu1 %v4967_v23  ;;  %656 = vmatprep.mubr.bf16.mxu1 %v5282_v52  ;;  %v835_v21 = vsub.s32 0, %v834_v20  ;;  %v839_v23 = vsub.s32 1, %v834_v20 }
 0x131   :  { %772 = vmatprep.subr.bf16.mxu1 %v4972_v25  ;;  %v5283_v25 = vmov 1983009808  }
 0x132   :  { %v836_v24 = vrot.slane %v831_v22, %v835_v21 }
 0x134   :  { %773 = vmatpush1.bf16.msra.mxu1 %v4970_v26  ;;  %v865_v26 = vunpack.c.l.s4 %v5283_v25 }
 0x135   :  { %774 = vmatprep.subr.bf16.mxu1 %v4975_v27  ;;  %v840_v27 = vrot.slane %v831_v22, %v839_v23 }
 0x137   :  { %657 = vmatmul.mubr.bf16.gmra.mrb[4].mxu1 %v361_v31 }
 0x138   :  { %775 = vmatpush1.bf16.msra.mxu1 %v4973_v30  ;;  %802 = vmatprep.mubr.bf16.mxu1 %v5282_v52  ;;  %v866_v30 = vunpack.c.0.s8 %v865_v26 }
 0x139   :  { %776 = vmatprep.subr.bf16.mxu1 %v4978_v32 }
 0x13c   :  { %777 = vmatpush1.bf16.msra.mxu1 %v4976_v33 }
 0x13d   :  { %778 = vmatprep.subr.bf16.mxu1 %v4981_v34 }
 0x140   :  { %779 = vmatpush1.bf16.msra.mxu1 %v4979_v35 }
 0x141   :  { %780 = vmatprep.subr.bf16.mxu1 %v4984_v36 }
 0x144   :  { %781 = vmatpush1.bf16.msra.mxu1 %v4982_v37 }
 0x145   :  { %782 = vmatprep.subr.bf16.mxu1 %v4987_v38 }
 0x148   :  { %783 = vmatpush1.bf16.msra.mxu1 %v4985_v39  ;;  %v5660_v39 = vsub.s32 %v866_v30, %v834_v20 }
 0x149   :  { %784 = vmatprep.subr.bf16.mxu1 %v4990_v40 }
 0x14c   :  { %785 = vmatpush1.bf16.msra.mxu1 %v4988_v41 }
 0x14d   :  { %4523 = vmatprep.subr.bf16.mxu1 %v4993_v50 }
 0x14f   :  { %803 = vmatmul.mubr.bf16.vlgmr.msra.gmra.mrb[0].mxu1 %v671_v44 }
 0x150   :  { %812 = vmatprep.mubr.bf16.mxu1 %v5282_v52  ;;  %v4995_v52 = vld [vmem:[%s6597_s5 + $0x48] sm:$0xff]   ;;  %4524 = vmatpush3.bf16.msra.mxu1 %v4994_v51 }
 0x151   :  { %4481 = vmatprep.subr.bf16.mxu0 %v4995_v52  ;;  %4525 = vmatprep.subr.bf16.mxu1 %v4997_v54 }
 0x152   :  { %4482 = vmatpush3.bf16.msra.mxu0 %v4996_v53 }
 0x153   :  { %4483 = vmatprep.subr.bf16.mxu0 %v4999_v56 }
 0x154   :  { %4526 = vmatpush3.bf16.msra.mxu1 %v4998_v55 }
 0x155   :  { %4527 = vmatprep.subr.bf16.mxu1 %v5001_v58 }
 0x156   :  { %4484 = vmatpush3.bf16.msra.mxu0 %v5000_v57 }
 0x157   :  { %813 = vmatmul.mubr.bf16.gmra.mrb[4].mxu1 %v672_v47  ;;  %4485 = vmatprep.subr.bf16.mxu0 %v5003_v60 }
 0x158   :  { %4528 = vmatpush3.bf16.msra.mxu1 %v5002_v59 }
 0x159   :  { %4529 = vmatprep.subr.bf16.mxu1 %v5005_v62 }
 0x15a   :  { %4486 = vmatpush3.bf16.msra.mxu0 %v5004_v61 }
 0x15b   :  { %4487 = vmatprep.subr.bf16.mxu0 %v5007_v0 }
 0x15c   :  { %4530 = vmatpush3.bf16.msra.mxu1 %v5006_v63 }
 0x15d   :  { %4531 = vmatprep.subr.bf16.mxu1 %v5009_v2 }
 0x15e   :  { %4488 = vmatpush3.bf16.msra.mxu0 %v5008_v1 }
 0x15f   :  { %4489 = vmatprep.subr.bf16.mxu0 %v5011_v5 }
 0x160   :  { %4532 = vmatpush3.bf16.msra.mxu1 %v5010_v4 }
 0x161   :  { %4533 = vmatprep.subr.bf16.mxu1 %v5013_v7 }
 0x162   :  { %4490 = vmatpush3.bf16.msra.mxu0 %v5012_v6 }
 0x163   :  { %4491 = vmatprep.subr.bf16.mxu0 %v5015_v9 }
 0x164   :  { %4534 = vmatpush3.bf16.msra.mxu1 %v5014_v8 }
 0x165   :  { %4535 = vmatprep.subr.bf16.mxu1 %v5017_v11 }
 0x166   :  { %4492 = vmatpush3.bf16.msra.mxu0 %v5016_v10 }
 0x167   :  { %4493 = vmatprep.subr.bf16.mxu0 %v5019_v12 }
 0x168   :  { %4536 = vmatpush3.bf16.msra.mxu1 %v5018_v13 }
 0x169   :  { %4537 = vmatprep.subr.bf16.mxu1 %v5021_v14 }
 0x16a   :  { %4494 = vmatpush3.bf16.msra.mxu0 %v5020_v15 }
 0x16b   :  { %4501 = vmatprep.subr.bf16.mxu0 %v5023_v16 }
 0x16c   :  { %4538 = vmatpush3.bf16.msra.mxu1 %v5022_v17 }
 0x16d   :  { %4567 = vmatprep.subr.bf16.mxu1 %v5026_v18 }
 0x222   :  { %v804_v28 = vpop.f32.mrb[0].mxu1 }
 0x223   :  { %v843_v29 = vadd.f32 %v836_v24, %v804_v28  ;;  %v806_v31 = vpop.f32.mrb[1].mxu1 }
 0x224   :  { %v844_v32 = vadd.f32 %v840_v27, %v806_v31  ;;  %v808_v33 = vpop.f32.mrb[2].mxu1 }
 0x225   :  { %v851_v34 = vmax.f32 %v843_v29, 0.0  ;;  %v845_v35 = vadd.f32 %v836_v24, %v808_v33  ;;  %v810_v36 = vpop.f32.mrb[3].mxu1 }
 0x226   :  { %v852_v37 = vmax.f32 %v844_v32, 0.0  ;;  %v846_v38 = vadd.f32 %v840_v27, %v810_v36 }
 0x227   :  { %v853_v40 = vmax.f32 %v845_v35, 0.0 }
 0x228   :  { %v863_v41 = vcombine.low %v851_v34, %v852_v37  ;;  %v923_v42 = vcombine.high %v851_v34, %v852_v37  ;;  %v854_v43 = vmax.f32 %v846_v38, 0.0 }
 0x22a   :  { %v981_v44 = vcombine.low %v853_v40, %v854_v43  ;;  %v1035_v45 = vcombine.high %v853_v40, %v854_v43  ;;  %v814_v46 = vpop.f32.mrb[4].mxu1  ;;  %v870_v47 = vrot.slane %v863_v41, %v5660_v39  ;;  %v930_v48 = vrot.slane %v923_v42, %v5660_v39 }
 0x22b   :  { %v847_v49 = vadd.f32 %v836_v24, %v814_v46  ;;  %v816_v50 = vpop.f32.mrb[5].mxu1 }
 0x22c   :  { %v818_v51 = vpop.f32.mrb[6].mxu1  ;;  %v5665_v52 = vrot.slane %v981_v44, %v5660_v39  ;;  %v5668_v53 = vrot.slane %v1035_v45, %v5660_v39  ;;  %v848_v54 = vadd.f32 %v840_v27, %v816_v50  ;;  %v903_v59 = vcombine.high %v870_v47, %v870_v47 }
 0x22d   :  { %v820_v55 = vpop.f32.mrb[7].mxu1  ;;  %v855_v56 = vmax.f32 %v847_v49, 0.0  ;;  %v849_v57 = vadd.f32 %v836_v24, %v818_v51  ;;  %v5670_v60 = vcombine.high %v930_v48, %v930_v48  ;;  %v894_v7 = vrot.slane %v870_v47, 1 }
 0x22e   :  { %v850_v58 = vadd.f32 %v840_v27, %v820_v55  ;;  %v856_v61 = vmax.f32 %v848_v54, 0.0  ;;  %v5674_v0 = vcombine.high %v5665_v52, %v5665_v52  ;;  %v5678_v1 = vcombine.high %v5668_v53, %v5668_v53 }
 0x22f   :  { %v857_v62 = vmax.f32 %v849_v57, 0.0  ;;  %v914_v8 = vrot.slane %v903_v59, 1  ;;  %v948_v9 = vrot.slane %v930_v48, 1  ;;  %v968_v10 = vrot.slane %v5670_v60, 1 }
 0x230   :  { %v858_v63 = vmax.f32 %v850_v58, 0.0  ;;  %v871_v2 = vcombine.low %v855_v56, %v856_v61  ;;  %v931_v4 = vcombine.high %v855_v56, %v856_v61  ;;  %v1006_v11 = vrot.slane %v5665_v52, 1 }
 0x231   :  { %v1026_v15 = vrot.slane %v5674_v0, 1  ;;  %v1060_v16 = vrot.slane %v5668_v53, 1  ;;  %v1080_v17 = vrot.slane %v5678_v1, 1 }
 0x232   :  { %v989_v5 = vcombine.low %v857_v62, %v858_v63  ;;  %v1043_v6 = vcombine.high %v857_v62, %v858_v63  ;;  %v878_v12 = vrot.slane %v871_v2, %v5660_v39  ;;  %v938_v13 = vrot.slane %v931_v4, %v5660_v39 }
 0x234   :  { %v996_v14 = vrot.slane %v989_v5, %v5660_v39  ;;  %v5689_v18 = vrot.slane %v1043_v6, %v5660_v39  ;;  %v883_v19 = vrot.slane %v878_v12, 7  ;;  %v897_v20 = vsel %vm884_vm2, %v878_v12, %v894_v7 }
 0x235   :  { %v904_v21 = vcombine.high %v878_v12, %v878_v12  ;;  %v941_v22 = vrot.slane %v938_v13, 7  ;;  %v898_v23 = vsel %vm886_vm3, %v878_v12, %v897_v20  ;;  %v951_v24 = vsel %vm884_vm2, %v938_v13, %v948_v9 }
 0x236   :  { %v958_v25 = vcombine.high %v938_v13, %v938_v13  ;;  %v999_v26 = vrot.slane %v996_v14, 7  ;;  %v885_v27 = vsel %vm884_vm2, %v883_v19, %v870_v47  ;;  %v899_v28 = vsel %vm888_vm4, %v878_v12, %v898_v23 }
 0x237   :  { %v5696_v29 = vrot.slane %v904_v21, 7  ;;  %v917_v30 = vsel %vm884_vm2, %v904_v21, %v914_v8  ;;  %v887_v31 = vsel %vm886_vm3, %v883_v19, %v885_v27  ;;  %v900_v32 = vsel %vm890_vm5, %v878_v12, %v899_v28 }
 0x238   :  { %v918_v33 = vsel %vm886_vm3, %v904_v21, %v917_v30  ;;  %v942_v34 = vsel %vm884_vm2, %v941_v22, %v930_v48  ;;  %v889_v35 = vsel %vm888_vm4, %v883_v19, %v887_v31  ;;  %902 = vst [vmem:[#allocation4 + $0x4] sm:$0xf] %v900_v32  ;;  %v952_v45 = vsel %vm886_vm3, %v938_v13, %v951_v24 }
 0x239   :  { %v908_v36 = vsel %vm884_vm2, %v5696_v29, %v903_v59  ;;  %v919_v37 = vsel %vm888_vm4, %v904_v21, %v918_v33  ;;  %v943_v38 = vsel %vm886_vm3, %v941_v22, %v942_v34  ;;  %v891_v40 = vsel %vm890_vm5, %v883_v19, %v889_v35 }
 0x23a   :  { %v909_v41 = vsel %vm886_vm3, %v5696_v29, %v908_v36  ;;  %v920_v42 = vsel %vm890_vm5, %v904_v21, %v919_v37  ;;  %v944_v43 = vsel %vm888_vm4, %v941_v22, %v943_v38  ;;  %893 = vst [vmem:[#allocation4] sm:$0xf] %v891_v40  ;;  %v961_v46 = vrot.slane %v958_v25, 7  ;;  %v5024_v36 = vld [vmem:[%s6597_s5 + $0x80] sm:$0xff]   ;;  %v5028_v38 = vld [vmem:[%s6597_s5 + $0xc8] sm:$0xff]  }
 0x23b   :  { %922 = vst [vmem:[#allocation4 + $0xc] sm:$0xf] %v920_v42  ;;  %v945_v44 = vsel %vm890_vm5, %v941_v22, %v944_v43  ;;  %v971_v47 = vsel %vm884_vm2, %v958_v25, %v968_v10  ;;  %v953_v48 = vsel %vm888_vm4, %v938_v13, %v952_v45  ;;  %v1000_v50 = vsel %vm884_vm2, %v999_v26, %v5665_v52 }
 0x23c   :  { %947 = vst [vmem:[#allocation4 + $0x10] sm:$0xf] %v945_v44  ;;  %v972_v49 = vsel %vm886_vm3, %v958_v25, %v971_v47  ;;  %v1009_v51 = vsel %vm884_vm2, %v996_v14, %v1006_v11  ;;  %v954_v54 = vsel %vm890_vm5, %v938_v13, %v953_v48  ;;  %v962_v55 = vsel %vm884_vm2, %v961_v46, %v5670_v60  ;;  %v5029_v47 = vld [vmem:[%s6597_s5 + $0x88] sm:$0xff]  }
 0x23d   :  { %v973_v56 = vsel %vm888_vm4, %v958_v25, %v972_v49  ;;  %v1001_v57 = vsel %vm886_vm3, %v999_v26, %v1000_v50  ;;  %956 = vst [vmem:[#allocation4 + $0x14] sm:$0xf] %v954_v54  ;;  %v963_v58 = vsel %vm886_vm3, %v961_v46, %v962_v55  ;;  %v1010_v52 = vsel %vm886_vm3, %v996_v14, %v1009_v51  ;;  %v5032_v49 = vld [vmem:[%s6597_s5 + $0xd0] sm:$0xff]  }
 0x23e   :  { %v974_v59 = vsel %vm890_vm5, %v958_v25, %v973_v56  ;;  %v1002_v61 = vsel %vm888_vm4, %v999_v26, %v1001_v57  ;;  %v1011_v63 = vsel %vm888_vm4, %v996_v14, %v1010_v52  ;;  %v1016_v2 = vcombine.high %v996_v14, %v996_v14  ;;  %v5033_v55 = vld [vmem:[%s6597_s5 + $0x90] sm:$0xff]   ;;  %v5036_v56 = vld [vmem:[%s6597_s5 + $0xd8] sm:$0xff]  }
 0x23f   :  { %976 = vst [vmem:[#allocation4 + $0x1c] sm:$0xf] %v974_v59  ;;  %v1003_v62 = vsel %vm890_vm5, %v999_v26, %v1002_v61  ;;  %v1053_v60 = vrot.slane %v5689_v18, 7  ;;  %v1012_v4 = vsel %vm890_vm5, %v996_v14, %v1011_v63  ;;  %v1063_v5 = vsel %vm884_vm2, %v5689_v18, %v1060_v16  ;;  %v5030_v61 = vld [vmem:[%s6597_s5 + $0x248] sm:$0xff]   ;;  %v5040_v63 = vld [vmem:[%s6597_s5 + $0xe0] sm:$0xff]  }
 0x240   :  { %1005 = vst [vmem:[#allocation4 + $0x20] sm:$0xf] %v1003_v62  ;;  %v1070_v6 = vcombine.high %v5689_v18, %v5689_v18  ;;  %v910_v7 = vsel %vm888_vm4, %v5696_v29, %v909_v41  ;;  %1014 = vst [vmem:[#allocation4 + $0x24] sm:$0xf] %v1012_v4  ;;  %v1019_v8 = vrot.slane %v1016_v2, 7  ;;  %v1029_v9 = vsel %vm884_vm2, %v1016_v2, %v1026_v15  ;;  %v5037_v62 = vld [vmem:[%s6597_s5 + $0x98] sm:$0xff]  }
 0x241   :  { %v1054_v10 = vsel %vm884_vm2, %v1053_v60, %v5668_v53  ;;  %v1064_v11 = vsel %vm886_vm3, %v5689_v18, %v1063_v5  ;;  %v1030_v12 = vsel %vm886_vm3, %v1016_v2, %v1029_v9  ;;  %v1089_v19 = vld [vmem:[#allocation4] sm:$0xff]  ;;  %v911_v30 = vsel %vm890_vm5, %v5696_v29, %v910_v7  ;;  %v5044_v5 = vld [vmem:[%s6597_s5 + $0xe8] sm:$0xff]   ;;  %v5038_v7 = vld [vmem:[%s6597_s5 + $0x258] sm:$0xff]  }
 0x242   :  { %v1055_v13 = vsel %vm886_vm3, %v1053_v60, %v1054_v10  ;;  %v1065_v14 = vsel %vm888_vm4, %v5689_v18, %v1064_v11  ;;  %v1073_v16 = vrot.slane %v1070_v6, 7  ;;  %v1020_v20 = vsel %vm884_vm2, %v1019_v8, %v5674_v0  ;;  %913 = vst [vmem:[#allocation4 + $0x8] sm:$0xf] %v911_v30  ;;  %v5041_v4 = vld [vmem:[%s6597_s5 + $0xa0] sm:$0xff]   ;;  %v5048_v9 = vld [vmem:[%s6597_s5 + $0xf0] sm:$0xff]   ;;  %v5039_v10 = vld [vmem:[%s6597_s5 + $0x218] sm:$0xff]  }
 0x243   :  { %v1031_v15 = vsel %vm888_vm4, %v1016_v2, %v1030_v12  ;;  %v1056_v21 = vsel %vm888_vm4, %v1053_v60, %v1055_v13  ;;  %v1066_v53 = vsel %vm890_vm5, %v5689_v18, %v1065_v14  ;;  %v1021_v22 = vsel %vm886_vm3, %v1019_v8, %v1020_v20  ;;  %v5042_v12 = vld [vmem:[%s6597_s5 + $0x260] sm:$0xff]   ;;  %v5049_v13 = vld [vmem:[%s6597_s5 + $0xb0] sm:$0xff]   ;;  %v5052_v14 = vld [vmem:[%s6597_s5 + $0xf8] sm:$0xff]  }
 0x244   :  { %v1032_v23 = vsel %vm890_vm5, %v1016_v2, %v1031_v15  ;;  %v1057_v24 = vsel %vm890_vm5, %v1053_v60, %v1056_v21  ;;  %1068 = vst [vmem:[#allocation4 + $0x34] sm:$0xf] %v1066_v53  ;;  %v1074_v25 = vsel %vm884_vm2, %v1073_v16, %v5678_v1  ;;  %v1083_v26 = vsel %vm884_vm2, %v1070_v6, %v1080_v17  ;;  %v5783_v40 = vld [vmem:[#allocation4 + $0x10] sm:$0xff]  ;;  %v5031_v2 = vld [vmem:[%s6597_s5 + $0x208] sm:$0xff]   ;;  %v5053_v15 = vld [vmem:[%s6597_s5 + $0xb8] sm:$0xff]  }
 0x245   :  { %1034 = vst [vmem:[#allocation4 + $0x2c] sm:$0xf] %v1032_v23  ;;  %1059 = vst [vmem:[#allocation4 + $0x30] sm:$0xf] %v1057_v24  ;;  %v1075_v0 = vsel %vm886_vm3, %v1073_v16, %v1074_v25  ;;  %v1112_v18 = vrot.slane %v1089_v19, %v5660_v39  ;;  %v1105_v27 = vcombine.high %v1089_v19, %v1089_v19  ;;  %v5034_v60 = vld [vmem:[%s6597_s5 + $0x250] sm:$0xff]   ;;  %v5046_v20 = vld [vmem:[%s6597_s5 + $0x268] sm:$0xff]  }
 0x246   :  { %v1084_v28 = vsel %vm886_vm3, %v1070_v6, %v1083_v26  ;;  %v964_v31 = vsel %vm888_vm4, %v961_v46, %v963_v58  ;;  %v1022_v41 = vsel %vm888_vm4, %v1019_v8, %v1021_v22  ;;  %v1076_v44 = vsel %vm888_vm4, %v1073_v16, %v1075_v0  ;;  %v5027_v58 = vld [vmem:[%s6597_s5 + $0x200] sm:$0xff]   ;;  %v5047_v53 = vld [vmem:[%s6597_s5 + $0x228] sm:$0xff]   ;;  %v5050_v23 = vld [vmem:[%s6597_s5 + $0x270] sm:$0xff]  }
 0x247   :  { %v1085_v32 = vsel %vm888_vm4, %v1070_v6, %v1084_v28  ;;  %v1120_v33 = vcombine.high %v1112_v18, %v1112_v18  ;;  %v5771_v34 = vrot.slane %v1105_v27, %v5660_v39  ;;  %v965_v17 = vsel %vm890_vm5, %v961_v46, %v964_v31  ;;  %v5056_v21 = vld [vmem:[%s6597_s5 + $0x1c0] sm:$0xff]   ;;  %v5061_v26 = vld [vmem:[%s6597_s5 + $0x1c8] sm:$0xff]   ;;  %v5054_v28 = vld [vmem:[%s6597_s5 + $0x278] sm:$0xff]  }
 0x248   :  { %v1086_v1 = vsel %vm890_vm5, %v1070_v6, %v1085_v32  ;;  %967 = vst [vmem:[#allocation4 + $0x18] sm:$0xf] %v965_v17  ;;  %v1273_v37 = vpack.c.bf16 %v1112_v18, %v1112_v18  ;;  %v1023_v43 = vsel %vm890_vm5, %v1019_v8, %v1022_v41  ;;  %v1077_v45 = vsel %vm890_vm5, %v1073_v16, %v1076_v44  ;;  %v5035_v6 = vld [vmem:[%s6597_s5 + $0x210] sm:$0xff]   ;;  %v5045_v8 = vld [vmem:[%s6597_s5 + $0xa8] sm:$0xff]   ;;  %v5043_v16 = vld [vmem:[%s6597_s5 + $0x220] sm:$0xff]  }
 0x249   :  { %1088 = vst [vmem:[#allocation4 + $0x3c] sm:$0xf] %v1086_v1  ;;  %v1274_v35 = vpack.c.bf16 %v1120_v33, %v1120_v33  ;;  %v1121_v29 = vcombine.high %v5771_v34, %v5771_v34  ;;  %1025 = vst [vmem:[#allocation4 + $0x28] sm:$0xf] %v1023_v43  ;;  %v5791_v46 = vrot.slane %v5783_v40, %v5660_v39  ;;  %v1090_v48 = vld [vmem:[#allocation4 + $0x8] sm:$0xff]  ;;  %v5057_v24 = vld [vmem:[%s6597_s5 + $0x180] sm:$0xff]  }
 0x24a   :  { %1079 = vst [vmem:[#allocation4 + $0x38] sm:$0xf] %v1077_v45  ;;  %v1129_v50 = vrot.slane %v1090_v48, %v5660_v39  ;;  %v1122_v11 = vcombine.high %v1090_v48, %v1090_v48  ;;  %v1275_v25 = vpack.c.bf16 %v5771_v34, %v5771_v34  ;;  %v5051_v18 = vld [vmem:[%s6597_s5 + $0x230] sm:$0xff]   ;;  %v5062_v31 = vld [vmem:[%s6597_s5 + $0x188] sm:$0xff]   ;;  %v5055_v33 = vld [vmem:[%s6597_s5 + $0x238] sm:$0xff]  }
 0x24b   :  { %3392 = vmatprep.mubr.bf16.mxu0 %v1274_v35  ;;  %v1276_v42 = vpack.c.bf16 %v1121_v29, %v1121_v29  ;;  %v1154_v54 = vcombine.high %v5791_v46, %v5791_v46  ;;  %v5065_v32 = vld [vmem:[%s6597_s5 + $0x1d0] sm:$0xff]   ;;  %v5059_v34 = vld [vmem:[%s6597_s5 + $0x340] sm:$0xff]   ;;  %v5069_v35 = vld [vmem:[%s6597_s5 + $0x1d8] sm:$0xff]   ;;  %v1281_v29 = vpack.c.bf16 %v5791_v46, %v5791_v46 }
 0x24c   :  { %3393 = vmatmul.mubr.bf16.vlgmr.msra.gmra.mrb[4].mxu0 %v1273_v37  ;;  %v1137_v51 = vcombine.high %v1129_v50, %v1129_v50  ;;  %v1277_v59 = vpack.c.bf16 %v1129_v50, %v1129_v50  ;;  %v5860_v19 = vrot.slane %v1122_v11, %v5660_v39  ;;  %v5066_v17 = vld [vmem:[%s6597_s5 + $0x190] sm:$0xff]   ;;  %v5063_v37 = vld [vmem:[%s6597_s5 + $0x348] sm:$0xff]   ;;  %v5070_v41 = vld [vmem:[%s6597_s5 + $0x198] sm:$0xff]  }
 0x24d   :  { %4502 = vmatpush3.bf16.msra.mxu0 %v5024_v36  ;;  %3432 = vmatprep.mubr.bf16.mxu0 %v1276_v42  ;;  %v1282_v52 = vpack.c.bf16 %v1154_v54, %v1154_v54  ;;  %v5060_v36 = vld [vmem:[%s6597_s5 + $0x300] sm:$0xff]   ;;  %v5064_v43 = vld [vmem:[%s6597_s5 + $0x308] sm:$0xff]   ;;  %v5067_v44 = vld [vmem:[%s6597_s5 + $0x350] sm:$0xff]   ;;  %v1139_v54 = vcombine.high %v5783_v40, %v5783_v40 }
 0x24e   :  { %4503 = vmatprep.subr.bf16.mxu0 %v5028_v38  ;;  %v1278_v57 = vpack.c.bf16 %v1137_v51, %v1137_v51  ;;  %v1138_v22 = vcombine.high %v5860_v19, %v5860_v19  ;;  %v5073_v42 = vld [vmem:[%s6597_s5 + $0x1e0] sm:$0xff]   ;;  %v5077_v46 = vld [vmem:[%s6597_s5 + $0x1e8] sm:$0xff]   ;;  %v5071_v48 = vld [vmem:[%s6597_s5 + $0x358] sm:$0xff]  }
 0x24f   :  { %v5884_v0 = vld [vmem:[#allocation4 + $0x18] sm:$0xff]  ;;  %v5074_v45 = vld [vmem:[%s6597_s5 + $0x1a0] sm:$0xff]   ;;  %v5081_v50 = vld [vmem:[%s6597_s5 + $0x1f0] sm:$0xff]  }
 0x250   :  { %3472 = vmatprep.mubr.bf16.mxu1 %v1278_v57  ;;  %v1280_v27 = vpack.c.bf16 %v1138_v22, %v1138_v22  ;;  %v5897_v30 = vrot.slane %v5884_v0, %v5660_v39  ;;  %v5072_v51 = vld [vmem:[%s6597_s5 + $0x318] sm:$0xff]   ;;  %v5076_v40 = vld [vmem:[%s6597_s5 + $0x320] sm:$0xff]   ;;  %v5095_v11 = vld [vmem:[%s6597_s5 + $0x288] sm:$0xff]  }
 0x251   :  { %4504 = vmatpush3.bf16.msra.mxu0 %v5029_v47  ;;  %3473 = vmatmul.mubr.bf16.vlgmr.msra.gmra.mrb[8].mxu1 %v1277_v59  ;;  %v5068_v47 = vld [vmem:[%s6597_s5 + $0x310] sm:$0xff]   ;;  %v5085_v57 = vld [vmem:[%s6597_s5 + $0x1f8] sm:$0xff]   ;;  %v5079_v59 = vld [vmem:[%s6597_s5 + $0x368] sm:$0xff]  }
 0x252   :  { %4505 = vmatprep.subr.bf16.mxu0 %v5032_v49  ;;  %4568 = vmatpush3.bf16.msra.mxu1 %v5027_v58  ;;  %v1171_v1 = vcombine.high %v5897_v30, %v5897_v30  ;;  %v5078_v49 = vld [vmem:[%s6597_s5 + $0x1a8] sm:$0xff]   ;;  %v5975_v58 = vrot.slane %v1139_v54, %v5660_v39 }
 0x253   :  { %3552 = vmatprep.mubr.bf16.mxu1 %v1282_v52  ;;  %4569 = vmatprep.subr.bf16.mxu1 %v5030_v61  ;;  %v5086_v61 = vld [vmem:[%s6597_s5 + $0x1b8] sm:$0xff]   ;;  %v5089_v52 = vld [vmem:[%s6597_s5 + $0x2c0] sm:$0xff]   ;;  %v5128_v54 = vld [vmem:[%s6597_s5 + $0x388] sm:$0xff]  }
 0x254   :  { %v1286_v38 = vpack.c.bf16 %v1171_v1, %v1171_v1  ;;  %v5108_v1 = vld [vmem:[%s6597_s5 + $0x460] sm:$0xff]  }
 0x255   :  { %4506 = vmatpush3.bf16.msra.mxu0 %v5033_v55  ;;  %v5075_v55 = vld [vmem:[%s6597_s5 + $0x360] sm:$0xff]  }
 0x256   :  { %4507 = vmatprep.subr.bf16.mxu0 %v5036_v56  ;;  %4570 = vmatpush3.bf16.msra.mxu1 %v5031_v2  ;;  %v5082_v56 = vld [vmem:[%s6597_s5 + $0x1b0] sm:$0xff]  }
 0x257   :  { %4571 = vmatprep.subr.bf16.mxu1 %v5034_v60  ;;  %v5083_v2 = vld [vmem:[%s6597_s5 + $0x370] sm:$0xff]   ;;  %v5090_v60 = vld [vmem:[%s6597_s5 + $0x280] sm:$0xff]  }
 0x259   :  { %4508 = vmatpush3.bf16.msra.mxu0 %v5037_v62  ;;  %v5080_v62 = vld [vmem:[%s6597_s5 + $0x328] sm:$0xff]  }
 0x25a   :  { %4509 = vmatprep.subr.bf16.mxu0 %v5040_v63  ;;  %4572 = vmatpush3.bf16.msra.mxu1 %v5035_v6  ;;  %v1155_v63 = vcombine.high %v5975_v58, %v5975_v58  ;;  %v5094_v6 = vld [vmem:[%s6597_s5 + $0x2c8] sm:$0xff]  }
 0x25b   :  { %4573 = vmatprep.subr.bf16.mxu1 %v5038_v7  ;;  %v5084_v7 = vld [vmem:[%s6597_s5 + $0x330] sm:$0xff]  }
 0x25d   :  { %4510 = vmatpush3.bf16.msra.mxu0 %v5041_v4  ;;  %v1279_v4 = vpack.c.bf16 %v5860_v19, %v5860_v19  ;;  %v5099_v19 = vld [vmem:[%s6597_s5 + $0x290] sm:$0xff]  }
 0x25e   :  { %4511 = vmatprep.subr.bf16.mxu0 %v5044_v5  ;;  %4574 = vmatpush3.bf16.msra.mxu1 %v5039_v10  ;;  %v5999_v5 = vld [vmem:[#allocation4 + $0x20] sm:$0xff] }
 0x25f   :  { %4575 = vmatprep.subr.bf16.mxu1 %v5042_v12  ;;  %v6012_v10 = vrot.slane %v5999_v5, %v5660_v39  ;;  %v5098_v12 = vld [vmem:[%s6597_s5 + $0x2d0] sm:$0xff]  }
 0x261   :  { %4512 = vmatpush3.bf16.msra.mxu0 %v5045_v8  ;;  %v1284_v8 = vpack.c.bf16 %v1155_v63, %v1155_v63 }
 0x262   :  { %4513 = vmatprep.subr.bf16.mxu0 %v5048_v9  ;;  %4576 = vmatpush3.bf16.msra.mxu1 %v5043_v16  ;;  %v5087_v9 = vld [vmem:[%s6597_s5 + $0x378] sm:$0xff]   ;;  %v1188_v16 = vcombine.high %v6012_v10, %v6012_v10 }
 0x263   :  { %4577 = vmatprep.subr.bf16.mxu1 %v5046_v20  ;;  %v5102_v20 = vld [vmem:[%s6597_s5 + $0x2d8] sm:$0xff]  }
 0x264   :  { %v1290_v22 = vpack.c.bf16 %v1188_v16, %v1188_v16  ;;  %v5141_v16 = vld [vmem:[%s6597_s5 + $0x560] sm:$0xff]  }
 0x265   :  { %4514 = vmatpush3.bf16.msra.mxu0 %v5049_v13  ;;  %v5088_v13 = vld [vmem:[%s6597_s5 + $0x338] sm:$0xff]  }
 0x266   :  { %4515 = vmatprep.subr.bf16.mxu0 %v5052_v14  ;;  %4578 = vmatpush3.bf16.msra.mxu1 %v5047_v53  ;;  %v5092_v14 = vld [vmem:[%s6597_s5 + $0x440] sm:$0xff]   ;;  %v5096_v53 = vld [vmem:[%s6597_s5 + $0x448] sm:$0xff]  }
 0x267   :  { %4579 = vmatprep.subr.bf16.mxu1 %v5050_v23  ;;  %v5103_v23 = vld [vmem:[%s6597_s5 + $0x298] sm:$0xff]  }
 0x269   :  { %4516 = vmatpush3.bf16.msra.mxu0 %v5053_v15  ;;  %v5093_v15 = vld [vmem:[%s6597_s5 + $0x400] sm:$0xff]  }
 0x26a   :  { %4545 = vmatprep.subr.bf16.mxu0 %v5056_v21  ;;  %4580 = vmatpush3.bf16.msra.mxu1 %v5051_v18  ;;  %v1285_v21 = vpack.c.bf16 %v5897_v30, %v5897_v30  ;;  %v5107_v18 = vld [vmem:[%s6597_s5 + $0x2a0] sm:$0xff]   ;;  %v5104_v30 = vld [vmem:[%s6597_s5 + $0x458] sm:$0xff]  }
 0x26b   :  { %4581 = vmatprep.subr.bf16.mxu1 %v5054_v28  ;;  %v5101_v28 = vld [vmem:[%s6597_s5 + $0x410] sm:$0xff]  }
 0x26c   :  { %3433 = vmatmul.mubr.bf16.vlgmr.msra.gmra.mrb[8].mxu0 %v1275_v25  ;;  %v5097_v25 = vld [vmem:[%s6597_s5 + $0x408] sm:$0xff]  }
 0x26d   :  { %4546 = vmatpush3.bf16.msra.mxu0 %v5057_v24  ;;  %3512 = vmatprep.mubr.bf16.mxu0 %v1280_v27  ;;  %v5106_v24 = vld [vmem:[%s6597_s5 + $0x2e0] sm:$0xff]   ;;  %v5110_v27 = vld [vmem:[%s6597_s5 + $0x2e8] sm:$0xff]  }
 0x26e   :  { %4547 = vmatprep.subr.bf16.mxu0 %v5061_v26  ;;  %4582 = vmatpush3.bf16.msra.mxu1 %v5055_v33  ;;  %v5100_v26 = vld [vmem:[%s6597_s5 + $0x450] sm:$0xff]   ;;  %v5105_v33 = vld [vmem:[%s6597_s5 + $0x418] sm:$0xff]  }
 0x26f   :  { %4611 = vmatprep.subr.bf16.mxu1 %v5059_v34  ;;  %v1156_v34 = vcombine.high %v5884_v0, %v5884_v0  ;;  %v5109_v0 = vld [vmem:[%s6597_s5 + $0x420] sm:$0xff]  }
 0x271   :  { %4548 = vmatpush3.bf16.msra.mxu0 %v5062_v31  ;;  %3553 = vmatmul.mubr.bf16.vlgmr.msra.gmra.mrb[12].mxu1 %v1281_v29  ;;  %v5111_v31 = vld [vmem:[%s6597_s5 + $0x2a8] sm:$0xff]  }
 0x272   :  { %4549 = vmatprep.subr.bf16.mxu0 %v5065_v32  ;;  %4612 = vmatpush3.bf16.msra.mxu1 %v5060_v36  ;;  %v5114_v32 = vld [vmem:[%s6597_s5 + $0x2f0] sm:$0xff]   ;;  %v6090_v36 = vrot.slane %v1156_v34, %v5660_v39  ;;  %v5112_v29 = vld [vmem:[%s6597_s5 + $0x468] sm:$0xff]  }
 0x273   :  { %3632 = vmatprep.mubr.bf16.mxu1 %v1286_v38  ;;  %4613 = vmatprep.subr.bf16.mxu1 %v5063_v37  ;;  %v5119_v37 = vld [vmem:[%s6597_s5 + $0x2b8] sm:$0xff]   ;;  %v5122_v38 = vld [vmem:[%s6597_s5 + $0x3c0] sm:$0xff]   ;;  %v5161_v34 = vld [vmem:[%s6597_s5 + $0x488] sm:$0xff]  }
 0x275   :  { %4550 = vmatpush3.bf16.msra.mxu0 %v5066_v17  ;;  %v5115_v17 = vld [vmem:[%s6597_s5 + $0x2b0] sm:$0xff]  }
 0x276   :  { %4551 = vmatprep.subr.bf16.mxu0 %v5069_v35  ;;  %4614 = vmatpush3.bf16.msra.mxu1 %v5064_v43  ;;  %v5118_v35 = vld [vmem:[%s6597_s5 + $0x2f8] sm:$0xff]   ;;  %v5116_v43 = vld [vmem:[%s6597_s5 + $0x470] sm:$0xff]  }
 0x277   :  { %4615 = vmatprep.subr.bf16.mxu1 %v5067_v44  ;;  %v5123_v44 = vld [vmem:[%s6597_s5 + $0x380] sm:$0xff]  }
 0x279   :  { %4552 = vmatpush3.bf16.msra.mxu0 %v5070_v41  ;;  %v5113_v41 = vld [vmem:[%s6597_s5 + $0x428] sm:$0xff]  }
 0x27a   :  { %4553 = vmatprep.subr.bf16.mxu0 %v5073_v42  ;;  %4616 = vmatpush3.bf16.msra.mxu1 %v5068_v47  ;;  %v1172_v42 = vcombine.high %v6090_v36, %v6090_v36  ;;  %v5127_v47 = vld [vmem:[%s6597_s5 + $0x3c8] sm:$0xff]  }
 0x27b   :  { %4617 = vmatprep.subr.bf16.mxu1 %v5071_v48  ;;  %v5117_v48 = vld [vmem:[%s6597_s5 + $0x430] sm:$0xff]  }
 0x27d   :  { %4554 = vmatpush3.bf16.msra.mxu0 %v5074_v45  ;;  %v1283_v45 = vpack.c.bf16 %v5975_v58, %v5975_v58  ;;  %v5132_v58 = vld [vmem:[%s6597_s5 + $0x390] sm:$0xff]  }
 0x27e   :  { %4555 = vmatprep.subr.bf16.mxu0 %v5077_v46  ;;  %4618 = vmatpush3.bf16.msra.mxu1 %v5072_v51  ;;  %v6114_v46 = vld [vmem:[#allocation4 + $0x28] sm:$0xff] }
 0x27f   :  { %4619 = vmatprep.subr.bf16.mxu1 %v5075_v55  ;;  %v6127_v51 = vrot.slane %v6114_v46, %v5660_v39  ;;  %v5131_v55 = vld [vmem:[%s6597_s5 + $0x3d0] sm:$0xff]  }
 0x281   :  { %4556 = vmatpush3.bf16.msra.mxu0 %v5078_v49  ;;  %v1288_v49 = vpack.c.bf16 %v1172_v42, %v1172_v42 }
 0x282   :  { %4557 = vmatprep.subr.bf16.mxu0 %v5081_v50  ;;  %4620 = vmatpush3.bf16.msra.mxu1 %v5076_v40  ;;  %v5120_v50 = vld [vmem:[%s6597_s5 + $0x478] sm:$0xff]   ;;  %v1205_v40 = vcombine.high %v6127_v51, %v6127_v51 }
 0x283   :  { %4621 = vmatprep.subr.bf16.mxu1 %v5079_v59  ;;  %v5135_v59 = vld [vmem:[%s6597_s5 + $0x3d8] sm:$0xff]  }
 0x284   :  { %v1294_v63 = vpack.c.bf16 %v1205_v40, %v1205_v40  ;;  %v5174_v40 = vld [vmem:[%s6597_s5 + $0x660] sm:$0xff]  }
 0x285   :  { %4558 = vmatpush3.bf16.msra.mxu0 %v5082_v56  ;;  %v5121_v56 = vld [vmem:[%s6597_s5 + $0x438] sm:$0xff]  }
 0x286   :  { %4559 = vmatprep.subr.bf16.mxu0 %v5085_v57  ;;  %4622 = vmatpush3.bf16.msra.mxu1 %v5080_v62  ;;  %v5125_v57 = vld [vmem:[%s6597_s5 + $0x540] sm:$0xff]   ;;  %v5129_v62 = vld [vmem:[%s6597_s5 + $0x548] sm:$0xff]  }
 0x287   :  { %4623 = vmatprep.subr.bf16.mxu1 %v5083_v2  ;;  %v5136_v2 = vld [vmem:[%s6597_s5 + $0x398] sm:$0xff]  }
 0x289   :  { %4560 = vmatpush3.bf16.msra.mxu0 %v5086_v61  ;;  %v5126_v61 = vld [vmem:[%s6597_s5 + $0x500] sm:$0xff]  }
 0x28a   :  { %4589 = vmatprep.subr.bf16.mxu0 %v5089_v52  ;;  %4624 = vmatpush3.bf16.msra.mxu1 %v5084_v7  ;;  %v1289_v52 = vpack.c.bf16 %v6012_v10, %v6012_v10  ;;  %v5140_v7 = vld [vmem:[%s6597_s5 + $0x3a0] sm:$0xff]   ;;  %v5137_v10 = vld [vmem:[%s6597_s5 + $0x558] sm:$0xff]  }
 0x28b   :  { %4625 = vmatprep.subr.bf16.mxu1 %v5087_v9  ;;  %v5134_v9 = vld [vmem:[%s6597_s5 + $0x510] sm:$0xff]  }
 0x28c   :  { %3513 = vmatmul.mubr.bf16.vlgmr.msra.gmra.mrb[12].mxu0 %v1279_v4  ;;  %v5130_v4 = vld [vmem:[%s6597_s5 + $0x508] sm:$0xff]  }
 0x28d   :  { %4590 = vmatpush3.bf16.msra.mxu0 %v5090_v60  ;;  %3592 = vmatprep.mubr.bf16.mxu0 %v1284_v8  ;;  %v5139_v60 = vld [vmem:[%s6597_s5 + $0x3e0] sm:$0xff]   ;;  %v5143_v8 = vld [vmem:[%s6597_s5 + $0x3e8] sm:$0xff]  }
 0x28e   :  { %4591 = vmatprep.subr.bf16.mxu0 %v5094_v6  ;;  %4626 = vmatpush3.bf16.msra.mxu1 %v5088_v13  ;;  %v5133_v6 = vld [vmem:[%s6597_s5 + $0x550] sm:$0xff]   ;;  %v5138_v13 = vld [vmem:[%s6597_s5 + $0x518] sm:$0xff]  }
 0x28f   :  { %4655 = vmatprep.subr.bf16.mxu1 %v5092_v14  ;;  %v1173_v14 = vcombine.high %v5999_v5, %v5999_v5  ;;  %v5142_v5 = vld [vmem:[%s6597_s5 + $0x520] sm:$0xff]  }
 0x291   :  { %4592 = vmatpush3.bf16.msra.mxu0 %v5095_v11  ;;  %3633 = vmatmul.mubr.bf16.vlgmr.msra.gmra.mrb[16].mxu1 %v1285_v21  ;;  %v5144_v11 = vld [vmem:[%s6597_s5 + $0x3a8] sm:$0xff]  }
 0x292   :  { %4593 = vmatprep.subr.bf16.mxu0 %v5098_v12  ;;  %4656 = vmatpush3.bf16.msra.mxu1 %v5093_v15  ;;  %v5147_v12 = vld [vmem:[%s6597_s5 + $0x3f0] sm:$0xff]   ;;  %v6205_v15 = vrot.slane %v1173_v14, %v5660_v39  ;;  %v5145_v21 = vld [vmem:[%s6597_s5 + $0x568] sm:$0xff]  }
 0x293   :  { %3712 = vmatprep.mubr.bf16.mxu1 %v1290_v22  ;;  %4657 = vmatprep.subr.bf16.mxu1 %v5096_v53  ;;  %v5152_v53 = vld [vmem:[%s6597_s5 + $0x3b8] sm:$0xff]   ;;  %v5155_v22 = vld [vmem:[%s6597_s5 + $0x4c0] sm:$0xff]   ;;  %v5194_v14 = vld [vmem:[%s6597_s5 + $0x588] sm:$0xff]  }
 0x295   :  { %4594 = vmatpush3.bf16.msra.mxu0 %v5099_v19  ;;  %v5148_v19 = vld [vmem:[%s6597_s5 + $0x3b0] sm:$0xff]  }
 0x296   :  { %4595 = vmatprep.subr.bf16.mxu0 %v5102_v20  ;;  %4658 = vmatpush3.bf16.msra.mxu1 %v5097_v25  ;;  %v5151_v20 = vld [vmem:[%s6597_s5 + $0x3f8] sm:$0xff]   ;;  %v5149_v25 = vld [vmem:[%s6597_s5 + $0x570] sm:$0xff]  }
 0x297   :  { %4659 = vmatprep.subr.bf16.mxu1 %v5100_v26  ;;  %v5156_v26 = vld [vmem:[%s6597_s5 + $0x480] sm:$0xff]  }
 0x299   :  { %4596 = vmatpush3.bf16.msra.mxu0 %v5103_v23  ;;  %v5146_v23 = vld [vmem:[%s6597_s5 + $0x528] sm:$0xff]  }
 0x29a   :  { %4597 = vmatprep.subr.bf16.mxu0 %v5106_v24  ;;  %4660 = vmatpush3.bf16.msra.mxu1 %v5101_v28  ;;  %v1189_v24 = vcombine.high %v6205_v15, %v6205_v15  ;;  %v5160_v28 = vld [vmem:[%s6597_s5 + $0x4c8] sm:$0xff]  }
 0x29b   :  { %4661 = vmatprep.subr.bf16.mxu1 %v5104_v30  ;;  %v5150_v30 = vld [vmem:[%s6597_s5 + $0x530] sm:$0xff]  }
 0x29d   :  { %4598 = vmatpush3.bf16.msra.mxu0 %v5107_v18  ;;  %v1287_v18 = vpack.c.bf16 %v6090_v36, %v6090_v36  ;;  %v5165_v36 = vld [vmem:[%s6597_s5 + $0x490] sm:$0xff]  }
 0x29e   :  { %4599 = vmatprep.subr.bf16.mxu0 %v5110_v27  ;;  %4662 = vmatpush3.bf16.msra.mxu1 %v5105_v33  ;;  %v6229_v27 = vld [vmem:[#allocation4 + $0x30] sm:$0xff] }
 0x29f   :  { %4663 = vmatprep.subr.bf16.mxu1 %v5108_v1  ;;  %v6242_v33 = vrot.slane %v6229_v27, %v5660_v39  ;;  %v5164_v1 = vld [vmem:[%s6597_s5 + $0x4d0] sm:$0xff]  }
 0x2a1   :  { %4600 = vmatpush3.bf16.msra.mxu0 %v5111_v31  ;;  %v1292_v31 = vpack.c.bf16 %v1189_v24, %v1189_v24 }
 0x2a2   :  { %4601 = vmatprep.subr.bf16.mxu0 %v5114_v32  ;;  %4664 = vmatpush3.bf16.msra.mxu1 %v5109_v0  ;;  %v5153_v32 = vld [vmem:[%s6597_s5 + $0x578] sm:$0xff]   ;;  %v1222_v0 = vcombine.high %v6242_v33, %v6242_v33 }
 0x2a3   :  { %4665 = vmatprep.subr.bf16.mxu1 %v5112_v29  ;;  %v5168_v29 = vld [vmem:[%s6597_s5 + $0x4d8] sm:$0xff]  }
 0x2a4   :  { %v1298_v42 = vpack.c.bf16 %v1222_v0, %v1222_v0  ;;  %v5207_v0 = vld [vmem:[%s6597_s5 + $0x760] sm:$0xff]  }
 0x2a5   :  { %4602 = vmatpush3.bf16.msra.mxu0 %v5115_v17  ;;  %v5154_v17 = vld [vmem:[%s6597_s5 + $0x538] sm:$0xff]  }
 0x2a6   :  { %4603 = vmatprep.subr.bf16.mxu0 %v5118_v35  ;;  %4666 = vmatpush3.bf16.msra.mxu1 %v5113_v41  ;;  %v5158_v35 = vld [vmem:[%s6597_s5 + $0x640] sm:$0xff]   ;;  %v5162_v41 = vld [vmem:[%s6597_s5 + $0x648] sm:$0xff]  }
 0x2a7   :  { %4667 = vmatprep.subr.bf16.mxu1 %v5116_v43  ;;  %v5169_v43 = vld [vmem:[%s6597_s5 + $0x498] sm:$0xff]  }
 0x2a9   :  { %4604 = vmatpush3.bf16.msra.mxu0 %v5119_v37  ;;  %v5159_v37 = vld [vmem:[%s6597_s5 + $0x600] sm:$0xff]  }
 0x2aa   :  { %4633 = vmatprep.subr.bf16.mxu0 %v5122_v38  ;;  %4668 = vmatpush3.bf16.msra.mxu1 %v5117_v48  ;;  %v1293_v38 = vpack.c.bf16 %v6127_v51, %v6127_v51  ;;  %v5173_v48 = vld [vmem:[%s6597_s5 + $0x4a0] sm:$0xff]   ;;  %v5170_v51 = vld [vmem:[%s6597_s5 + $0x658] sm:$0xff]  }
 0x2ab   :  { %4669 = vmatprep.subr.bf16.mxu1 %v5120_v50  ;;  %v5167_v50 = vld [vmem:[%s6597_s5 + $0x610] sm:$0xff]  }
 0x2ac   :  { %3593 = vmatmul.mubr.bf16.vlgmr.msra.gmra.mrb[16].mxu0 %v1283_v45  ;;  %v5163_v45 = vld [vmem:[%s6597_s5 + $0x608] sm:$0xff]  }
 0x2ad   :  { %4634 = vmatpush3.bf16.msra.mxu0 %v5123_v44  ;;  %3672 = vmatprep.mubr.bf16.mxu0 %v1288_v49  ;;  %v5172_v44 = vld [vmem:[%s6597_s5 + $0x4e0] sm:$0xff]   ;;  %v5176_v49 = vld [vmem:[%s6597_s5 + $0x4e8] sm:$0xff]  }
 0x2ae   :  { %4635 = vmatprep.subr.bf16.mxu0 %v5127_v47  ;;  %4670 = vmatpush3.bf16.msra.mxu1 %v5121_v56  ;;  %v5166_v47 = vld [vmem:[%s6597_s5 + $0x650] sm:$0xff]   ;;  %v5171_v56 = vld [vmem:[%s6597_s5 + $0x618] sm:$0xff]  }
 0x2af   :  { %4699 = vmatprep.subr.bf16.mxu1 %v5125_v57  ;;  %v1190_v57 = vcombine.high %v6114_v46, %v6114_v46  ;;  %v5175_v46 = vld [vmem:[%s6597_s5 + $0x620] sm:$0xff]  }
 0x2b1   :  { %4636 = vmatpush3.bf16.msra.mxu0 %v5128_v54  ;;  %3713 = vmatmul.mubr.bf16.vlgmr.msra.gmra.mrb[20].mxu1 %v1289_v52  ;;  %v5177_v54 = vld [vmem:[%s6597_s5 + $0x4a8] sm:$0xff]  }
 0x2b2   :  { %4637 = vmatprep.subr.bf16.mxu0 %v5131_v55  ;;  %4700 = vmatpush3.bf16.msra.mxu1 %v5126_v61  ;;  %v5180_v55 = vld [vmem:[%s6597_s5 + $0x4f0] sm:$0xff]   ;;  %v6320_v61 = vrot.slane %v1190_v57, %v5660_v39  ;;  %v5178_v52 = vld [vmem:[%s6597_s5 + $0x668] sm:$0xff]   ;;  %v5220_v57 = vld [vmem:[%s6597_s5 + $0x738] sm:$0xff]  }
 0x2b3   :  { %3792 = vmatprep.mubr.bf16.mxu1 %v1294_v63  ;;  %4701 = vmatprep.subr.bf16.mxu1 %v5129_v62  ;;  %v5185_v62 = vld [vmem:[%s6597_s5 + $0x4b8] sm:$0xff]   ;;  %v5188_v63 = vld [vmem:[%s6597_s5 + $0x5c0] sm:$0xff]  }
 0x2b5   :  { %4638 = vmatpush3.bf16.msra.mxu0 %v5132_v58  ;;  %v5181_v58 = vld [vmem:[%s6597_s5 + $0x4b0] sm:$0xff]  }
 0x2b6   :  { %4639 = vmatprep.subr.bf16.mxu0 %v5135_v59  ;;  %4702 = vmatpush3.bf16.msra.mxu1 %v5130_v4  ;;  %v5184_v59 = vld [vmem:[%s6597_s5 + $0x4f8] sm:$0xff]   ;;  %v5182_v4 = vld [vmem:[%s6597_s5 + $0x670] sm:$0xff]  }
 0x2b7   :  { %4703 = vmatprep.subr.bf16.mxu1 %v5133_v6  ;;  %v5189_v6 = vld [vmem:[%s6597_s5 + $0x580] sm:$0xff]  }
 0x2b9   :  { %4640 = vmatpush3.bf16.msra.mxu0 %v5136_v2  ;;  %v5179_v2 = vld [vmem:[%s6597_s5 + $0x628] sm:$0xff]  }
 0x2ba   :  { %4641 = vmatprep.subr.bf16.mxu0 %v5139_v60  ;;  %4704 = vmatpush3.bf16.msra.mxu1 %v5134_v9  ;;  %v1206_v60 = vcombine.high %v6320_v61, %v6320_v61  ;;  %v5193_v9 = vld [vmem:[%s6597_s5 + $0x5c8] sm:$0xff]  }
 0x2bb   :  { %4705 = vmatprep.subr.bf16.mxu1 %v5137_v10  ;;  %v5183_v10 = vld [vmem:[%s6597_s5 + $0x630] sm:$0xff]  }
 0x2bd   :  { %4642 = vmatpush3.bf16.msra.mxu0 %v5140_v7  ;;  %v1291_v7 = vpack.c.bf16 %v6205_v15, %v6205_v15  ;;  %v5198_v15 = vld [vmem:[%s6597_s5 + $0x590] sm:$0xff]  }
 0x2be   :  { %4643 = vmatprep.subr.bf16.mxu0 %v5143_v8  ;;  %4706 = vmatpush3.bf16.msra.mxu1 %v5138_v13  ;;  %v6344_v8 = vld [vmem:[#allocation4 + $0x38] sm:$0xff] }
 0x2bf   :  { %4707 = vmatprep.subr.bf16.mxu1 %v5141_v16  ;;  %v6357_v13 = vrot.slane %v6344_v8, %v5660_v39  ;;  %v5197_v16 = vld [vmem:[%s6597_s5 + $0x5d0] sm:$0xff]  }
 0x2c1   :  { %4644 = vmatpush3.bf16.msra.mxu0 %v5144_v11  ;;  %v1296_v11 = vpack.c.bf16 %v1206_v60, %v1206_v60 }
 0x2c2   :  { %4645 = vmatprep.subr.bf16.mxu0 %v5147_v12  ;;  %4708 = vmatpush3.bf16.msra.mxu1 %v5142_v5  ;;  %v5186_v12 = vld [vmem:[%s6597_s5 + $0x678] sm:$0xff]   ;;  %v1239_v5 = vcombine.high %v6357_v13, %v6357_v13 }
 0x2c3   :  { %4709 = vmatprep.subr.bf16.mxu1 %v5145_v21  ;;  %v5201_v21 = vld [vmem:[%s6597_s5 + $0x5d8] sm:$0xff]  }
 0x2c4   :  { %v1302_v24 = vpack.c.bf16 %v1239_v5, %v1239_v5 }
 0x2c5   :  { %4646 = vmatpush3.bf16.msra.mxu0 %v5148_v19  ;;  %v5187_v19 = vld [vmem:[%s6597_s5 + $0x638] sm:$0xff]  }
 0x2c6   :  { %4647 = vmatprep.subr.bf16.mxu0 %v5151_v20  ;;  %4710 = vmatpush3.bf16.msra.mxu1 %v5146_v23  ;;  %v5191_v20 = vld [vmem:[%s6597_s5 + $0x740] sm:$0xff]   ;;  %v5195_v23 = vld [vmem:[%s6597_s5 + $0x748] sm:$0xff]  }
 0x2c7   :  { %4711 = vmatprep.subr.bf16.mxu1 %v5149_v25  ;;  %v5202_v25 = vld [vmem:[%s6597_s5 + $0x598] sm:$0xff]  }
 0x2c9   :  { %4648 = vmatpush3.bf16.msra.mxu0 %v5152_v53  ;;  %v5192_v53 = vld [vmem:[%s6597_s5 + $0x700] sm:$0xff]  }
 0x2ca   :  { %4677 = vmatprep.subr.bf16.mxu0 %v5155_v22  ;;  %4712 = vmatpush3.bf16.msra.mxu1 %v5150_v30  ;;  %v1297_v22 = vpack.c.bf16 %v6242_v33, %v6242_v33  ;;  %v5206_v30 = vld [vmem:[%s6597_s5 + $0x5a0] sm:$0xff]   ;;  %v5203_v33 = vld [vmem:[%s6597_s5 + $0x758] sm:$0xff]  }
 0x2cb   :  { %4713 = vmatprep.subr.bf16.mxu1 %v5153_v32  ;;  %v5200_v32 = vld [vmem:[%s6597_s5 + $0x710] sm:$0xff]  }
 0x2cc   :  { %3673 = vmatmul.mubr.bf16.vlgmr.msra.gmra.mrb[20].mxu0 %v1287_v18  ;;  %v5196_v18 = vld [vmem:[%s6597_s5 + $0x708] sm:$0xff]  }
 0x2cd   :  { %4678 = vmatpush3.bf16.msra.mxu0 %v5156_v26  ;;  %3752 = vmatprep.mubr.bf16.mxu0 %v1292_v31  ;;  %v5205_v26 = vld [vmem:[%s6597_s5 + $0x5e0] sm:$0xff]   ;;  %v5209_v31 = vld [vmem:[%s6597_s5 + $0x5e8] sm:$0xff]  }
 0x2ce   :  { %4679 = vmatprep.subr.bf16.mxu0 %v5160_v28  ;;  %4714 = vmatpush3.bf16.msra.mxu1 %v5154_v17  ;;  %v5199_v28 = vld [vmem:[%s6597_s5 + $0x750] sm:$0xff]   ;;  %v5204_v17 = vld [vmem:[%s6597_s5 + $0x718] sm:$0xff]  }
 0x2cf   :  { %4743 = vmatprep.subr.bf16.mxu1 %v5158_v35  ;;  %v1207_v35 = vcombine.high %v6229_v27, %v6229_v27  ;;  %v5208_v27 = vld [vmem:[%s6597_s5 + $0x720] sm:$0xff]  }
 0x2d1   :  { %4680 = vmatpush3.bf16.msra.mxu0 %v5161_v34  ;;  %3793 = vmatmul.mubr.bf16.vlgmr.msra.gmra.mrb[24].mxu1 %v1293_v38  ;;  %v5210_v34 = vld [vmem:[%s6597_s5 + $0x5a8] sm:$0xff]  }
 0x2d2   :  { %4681 = vmatprep.subr.bf16.mxu0 %v5164_v1  ;;  %4744 = vmatpush3.bf16.msra.mxu1 %v5159_v37  ;;  %v5213_v1 = vld [vmem:[%s6597_s5 + $0x5f0] sm:$0xff]   ;;  %v6435_v37 = vrot.slane %v1207_v35, %v5660_v39  ;;  %v5211_v38 = vld [vmem:[%s6597_s5 + $0x768] sm:$0xff]  }
 0x2d3   :  { %3872 = vmatprep.mubr.bf16.mxu1 %v1298_v42  ;;  %4745 = vmatprep.subr.bf16.mxu1 %v5162_v41  ;;  %v5218_v41 = vld [vmem:[%s6597_s5 + $0x5b8] sm:$0xff]   ;;  %v5221_v42 = vld [vmem:[%s6597_s5 + $0x6c0] sm:$0xff]  }
 0x2d5   :  { %4682 = vmatpush3.bf16.msra.mxu0 %v5165_v36  ;;  %v5214_v36 = vld [vmem:[%s6597_s5 + $0x5b0] sm:$0xff]  }
 0x2d6   :  { %4683 = vmatprep.subr.bf16.mxu0 %v5168_v29  ;;  %4746 = vmatpush3.bf16.msra.mxu1 %v5163_v45  ;;  %v5217_v29 = vld [vmem:[%s6597_s5 + $0x5f8] sm:$0xff]   ;;  %v5215_v45 = vld [vmem:[%s6597_s5 + $0x770] sm:$0xff]  }
 0x2d7   :  { %4747 = vmatprep.subr.bf16.mxu1 %v5166_v47  ;;  %v5222_v47 = vld [vmem:[%s6597_s5 + $0x680] sm:$0xff]  }
 0x2d9   :  { %4684 = vmatpush3.bf16.msra.mxu0 %v5169_v43  ;;  %v5212_v43 = vld [vmem:[%s6597_s5 + $0x728] sm:$0xff]  }
 0x2da   :  { %4685 = vmatprep.subr.bf16.mxu0 %v5172_v44  ;;  %4748 = vmatpush3.bf16.msra.mxu1 %v5167_v50  ;;  %v1223_v44 = vcombine.high %v6435_v37, %v6435_v37  ;;  %v5216_v50 = vld [vmem:[%s6597_s5 + $0x730] sm:$0xff]  }
 0x2db   :  { %4749 = vmatprep.subr.bf16.mxu1 %v5170_v51 }
 0x2dc   :  { %v1300_v51 = vpack.c.bf16 %v1223_v44, %v1223_v44 }
 0x2dd   :  { %4686 = vmatpush3.bf16.msra.mxu0 %v5173_v48  ;;  %v1295_v48 = vpack.c.bf16 %v6320_v61, %v6320_v61  ;;  %v5230_v61 = vld [vmem:[%s6597_s5 + $0x6e0] sm:$0xff]  }
 0x2de   :  { %4687 = vmatprep.subr.bf16.mxu0 %v5176_v49  ;;  %4750 = vmatpush3.bf16.msra.mxu1 %v5171_v56  ;;  %v5224_v49 = vld [vmem:[%s6597_s5 + $0x6c8] sm:$0xff]   ;;  %v5226_v56 = vld [vmem:[%s6597_s5 + $0x6d0] sm:$0xff]  }
 0x2df   :  { %4751 = vmatprep.subr.bf16.mxu1 %v5174_v40  ;;  %v5227_v40 = vld [vmem:[%s6597_s5 + $0x690] sm:$0xff]  }
 0x2e1   :  { %4688 = vmatpush3.bf16.msra.mxu0 %v5177_v54  ;;  %v5219_v54 = vld [vmem:[%s6597_s5 + $0x778] sm:$0xff]  }
 0x2e2   :  { %4689 = vmatprep.subr.bf16.mxu0 %v5180_v55  ;;  %4752 = vmatpush3.bf16.msra.mxu1 %v5175_v46  ;;  %v5225_v55 = vld [vmem:[%s6597_s5 + $0x688] sm:$0xff]   ;;  %v5229_v46 = vld [vmem:[%s6597_s5 + $0x698] sm:$0xff]  }
 0x2e3   :  { %4753 = vmatprep.subr.bf16.mxu1 %v5178_v52  ;;  %v5231_v52 = vld [vmem:[%s6597_s5 + $0x6a0] sm:$0xff]  }
 0x2e5   :  { %4690 = vmatpush3.bf16.msra.mxu0 %v5181_v58  ;;  %v5228_v58 = vld [vmem:[%s6597_s5 + $0x6d8] sm:$0xff]  }
 0x2e6   :  { %4691 = vmatprep.subr.bf16.mxu0 %v5184_v59  ;;  %4754 = vmatpush3.bf16.msra.mxu1 %v5179_v2  ;;  %v1301_v59 = vpack.c.bf16 %v6357_v13, %v6357_v13  ;;  %v5234_v2 = vld [vmem:[%s6597_s5 + $0x6f0] sm:$0xff]  }
 0x2e7   :  { %4755 = vmatprep.subr.bf16.mxu1 %v5182_v4  ;;  %v1224_v4 = vcombine.high %v6344_v8, %v6344_v8  ;;  %v5237_v8 = vld [vmem:[%s6597_s5 + $0x6b8] sm:$0xff]  }
 0x2e9   :  { %4692 = vmatpush3.bf16.msra.mxu0 %v5185_v62  ;;  %v5232_v62 = vld [vmem:[%s6597_s5 + $0x6e8] sm:$0xff]   ;;  %v1238_v13 = vrot.slane %v1224_v4, %v5660_v39  ;;  %v1299_v39 = vpack.c.bf16 %v6435_v37, %v6435_v37 }
 0x2ea   :  { %4721 = vmatprep.subr.bf16.mxu0 %v5188_v63  ;;  %4756 = vmatpush3.bf16.msra.mxu1 %v5183_v10  ;;  %v5233_v63 = vld [vmem:[%s6597_s5 + $0x6a8] sm:$0xff]   ;;  %v5235_v10 = vld [vmem:[%s6597_s5 + $0x6b0] sm:$0xff]  }
 0x2eb   :  { %4757 = vmatprep.subr.bf16.mxu1 %v5186_v12  ;;  %v5236_v12 = vld [vmem:[%s6597_s5 + $0x6f8] sm:$0xff]  }
 0x2ec   :  { %3753 = vmatmul.mubr.bf16.vlgmr.msra.gmra.mrb[24].mxu0 %v1291_v7 }
 0x2ed   :  { %4722 = vmatpush3.bf16.msra.mxu0 %v5189_v6  ;;  %3832 = vmatprep.mubr.bf16.mxu0 %v1296_v11 }
 0x2ee   :  { %4723 = vmatprep.subr.bf16.mxu0 %v5193_v9  ;;  %4758 = vmatpush3.bf16.msra.mxu1 %v5187_v19 }
 0x2ef   :  { %4787 = vmatprep.subr.bf16.mxu1 %v5191_v20  ;;  %v5239_v20 = vld [vmem:[%s6597_s5 + $0x780] sm:$0xff]  }
 0x2f1   :  { %4724 = vmatpush3.bf16.msra.mxu0 %v5194_v14  ;;  %3873 = vmatmul.mubr.bf16.vlgmr.msra.gmra.mrb[28].mxu1 %v1297_v22  ;;  %v5238_v14 = vld [vmem:[%s6597_s5 + $0x7c0] sm:$0xff]  }
 0x2f2   :  { %4725 = vmatprep.subr.bf16.mxu0 %v5197_v16  ;;  %4788 = vmatpush3.bf16.msra.mxu1 %v5192_v53  ;;  %v1240_v16 = vcombine.high %v1238_v13, %v1238_v13 }
 0x2f3   :  { %3952 = vmatprep.mubr.bf16.mxu1 %v1302_v24  ;;  %4789 = vmatprep.subr.bf16.mxu1 %v5195_v23  ;;  %v5242_v24 = vld [vmem:[%s6597_s5 + $0x788] sm:$0xff]  }
 0x2f4   :  { %v1304_v22 = vpack.c.bf16 %v1240_v16, %v1240_v16 }
 0x2f5   :  { %4726 = vmatpush3.bf16.msra.mxu0 %v5198_v15  ;;  %v5241_v15 = vld [vmem:[%s6597_s5 + $0x7c8] sm:$0xff]  }
 0x2f6   :  { %4727 = vmatprep.subr.bf16.mxu0 %v5201_v21  ;;  %4790 = vmatpush3.bf16.msra.mxu1 %v5196_v18  ;;  %v5245_v18 = vld [vmem:[%s6597_s5 + $0x7d8] sm:$0xff]  }
 0x2f7   :  { %4791 = vmatprep.subr.bf16.mxu1 %v5199_v28  ;;  %v5246_v28 = vld [vmem:[%s6597_s5 + $0x798] sm:$0xff]  }
 0x2f9   :  { %4728 = vmatpush3.bf16.msra.mxu0 %v5202_v25  ;;  %v5243_v25 = vld [vmem:[%s6597_s5 + $0x7d0] sm:$0xff]  }
 0x2fa   :  { %4729 = vmatprep.subr.bf16.mxu0 %v5205_v26  ;;  %4792 = vmatpush3.bf16.msra.mxu1 %v5200_v32  ;;  %v5244_v26 = vld [vmem:[%s6597_s5 + $0x790] sm:$0xff]   ;;  %v5249_v32 = vld [vmem:[%s6597_s5 + $0x7e8] sm:$0xff]  }
 0x2fb   :  { %4793 = vmatprep.subr.bf16.mxu1 %v5203_v33  ;;  %v5250_v33 = vld [vmem:[%s6597_s5 + $0x7a8] sm:$0xff]  }
 0x2fd   :  { %4730 = vmatpush3.bf16.msra.mxu0 %v5206_v30  ;;  %v5247_v30 = vld [vmem:[%s6597_s5 + $0x7e0] sm:$0xff]  }
 0x2fe   :  { %4731 = vmatprep.subr.bf16.mxu0 %v5209_v31  ;;  %4794 = vmatpush3.bf16.msra.mxu1 %v5204_v17  ;;  %v5248_v31 = vld [vmem:[%s6597_s5 + $0x7a0] sm:$0xff]  }
 0x2ff   :  { %4795 = vmatprep.subr.bf16.mxu1 %v5207_v0 }
 0x301   :  { %4732 = vmatpush3.bf16.msra.mxu0 %v5210_v34  ;;  %v4200_v34 = vld [vmem:[%s6598_s6] ss:$0 sm:$0xff] }
 0x302   :  { %4733 = vmatprep.subr.bf16.mxu0 %v5213_v1  ;;  %4796 = vmatpush3.bf16.msra.mxu1 %v5208_v27  ;;  %v5251_v1 = vld [vmem:[%s6597_s5 + $0x7f0] sm:$0xff]  }
 0x303   :  { %4797 = vmatprep.subr.bf16.mxu1 %v5211_v38  ;;  %v5252_v27 = vld [vmem:[%s6597_s5 + $0x7b0] sm:$0xff]   ;;  %v5253_v38 = vld [vmem:[%s6597_s5 + $0x7f8] sm:$0xff]  }
 0x305   :  { %4734 = vmatpush3.bf16.msra.mxu0 %v5214_v36 }
 0x306   :  { %4735 = vmatprep.subr.bf16.mxu0 %v5217_v29  ;;  %4798 = vmatpush3.bf16.msra.mxu1 %v5212_v43 }
 0x307   :  { %4799 = vmatprep.subr.bf16.mxu1 %v5215_v45 }
 0x309   :  { %4736 = vmatpush3.bf16.msra.mxu0 %v5218_v41 }
 0x30a   :  { %4765 = vmatprep.subr.bf16.mxu0 %v5221_v42  ;;  %4800 = vmatpush3.bf16.msra.mxu1 %v5216_v50  ;;  %v5254_v42 = vld [vmem:[%s6597_s5 + $0x7b8] sm:$0xff]  }
 0x30b   :  { %4801 = vmatprep.subr.bf16.mxu1 %v5219_v54 }
 0x30c   :  { %3833 = vmatmul.mubr.bf16.vlgmr.msra.gmra.mrb[28].mxu0 %v1295_v48 }
 0x30d   :  { %4766 = vmatpush3.bf16.msra.mxu0 %v5222_v47  ;;  %3912 = vmatprep.mubr.bf16.mxu0 %v1300_v51  ;;  %v1303_v47 = vpack.c.bf16 %v1238_v13, %v1238_v13 }
 0x30e   :  { %4767 = vmatprep.subr.bf16.mxu0 %v5224_v49  ;;  %4802 = vmatpush3.bf16.msra.mxu1 %v5220_v57 }
 0x30f   :  { %4870 = vmatprep.subr.bf16.mxu1 %v5281_v3 }
 0x311   :  { %4768 = vmatpush3.bf16.msra.mxu0 %v5225_v55  ;;  %3953 = vmatmul.mubr.bf16.vlgmr.msra.gmra.mrb[32].mxu1 %v1301_v59 }
 0x312   :  { %4769 = vmatprep.subr.bf16.mxu0 %v5226_v56  ;;  %4874 = vmatprep.mubr.msk.bf16.mxu1 %vm5284_vm6, %v5281_v3 }
 0x315   :  { %4770 = vmatpush3.bf16.msra.mxu0 %v5227_v40 }
 0x316   :  { %4771 = vmatprep.subr.bf16.mxu0 %v5228_v58 }
 0x319   :  { %4772 = vmatpush3.bf16.msra.mxu0 %v5229_v46 }
 0x31a   :  { %4773 = vmatprep.subr.bf16.mxu0 %v5230_v61 }
 0x31d   :  { %4774 = vmatpush3.bf16.msra.mxu0 %v5231_v52 }
 0x31e   :  { %4775 = vmatprep.subr.bf16.mxu0 %v5232_v62 }
 0x31f   :  { %v4495_v60 = vpop.f32.mrb[4].mxu0 }
 0x320   :  { %v4496_v6 = vpop.f32.mrb[5].mxu0 }
 0x321   :  { %v4497_v7 = vadd.f32 %v4496_v6, %v4495_v60  ;;  %4776 = vmatpush3.bf16.msra.mxu0 %v5233_v63  ;;  %v4498_v9 = vpop.f32.mrb[6].mxu0 }
 0x322   :  { %v4499_v11 = vpop.f32.mrb[7].mxu0  ;;  %4777 = vmatprep.subr.bf16.mxu0 %v5234_v2 }
 0x323   :  { %v3395_v0 = vadd.f32 %v4497_v7, %v4200_v34 }
 0x324   :  { %v4539_v19 = vpop.f32.mrb[8].mxu1 }
 0x325   :  { %4778 = vmatpush3.bf16.msra.mxu0 %v5235_v10  ;;  %v4540_v5 = vpop.f32.mrb[9].mxu1 }
 0x326   :  { %4779 = vmatprep.subr.bf16.mxu0 %v5236_v12  ;;  %v4541_v21 = vadd.f32 %v4540_v5, %v4539_v19  ;;  %v4542_v53 = vpop.f32.mrb[10].mxu1 }
 0x327   :  { %v4543_v23 = vpop.f32.mrb[11].mxu1 }
 0x329   :  { %4780 = vmatpush3.bf16.msra.mxu0 %v5237_v8 }
 0x32a   :  { %4809 = vmatprep.subr.bf16.mxu0 %v5238_v14 }
 0x32c   :  { %3913 = vmatmul.mubr.bf16.vlgmr.msra.gmra.mrb[32].mxu0 %v1299_v39 }
 0x32d   :  { %4810 = vmatpush3.bf16.msra.mxu0 %v5239_v20  ;;  %3992 = vmatprep.mubr.bf16.mxu0 %v1304_v22  ;;  %v5256_v22 = vld [vmem:[%s6599_s7 + $0x8] sm:$0xff]  }
 0x32e   :  { %4811 = vmatprep.subr.bf16.mxu0 %v5241_v15 }
 0x331   :  { %4812 = vmatpush3.bf16.msra.mxu0 %v5242_v24 }
 0x332   :  { %4813 = vmatprep.subr.bf16.mxu0 %v5243_v25 }
 0x335   :  { %4814 = vmatpush3.bf16.msra.mxu0 %v5244_v26 }
 0x336   :  { %4815 = vmatprep.subr.bf16.mxu0 %v5245_v18 }
 0x339   :  { %4816 = vmatpush3.bf16.msra.mxu0 %v5246_v28 }
 0x33a   :  { %4817 = vmatprep.subr.bf16.mxu0 %v5247_v30 }
 0x33d   :  { %4818 = vmatpush3.bf16.msra.mxu0 %v5248_v31 }
 0x33e   :  { %4819 = vmatprep.subr.bf16.mxu0 %v5249_v32 }
 0x33f   :  { %v4517_v17 = vpop.f32.mrb[8].mxu0 }
 0x340   :  { %v4518_v35 = vpop.f32.mrb[9].mxu0 }
 0x341   :  { %v4519_v36 = vadd.f32 %v4518_v35, %v4517_v17  ;;  %v4520_v29 = vpop.f32.mrb[10].mxu0  ;;  %4820 = vmatpush3.bf16.msra.mxu0 %v5250_v33 }
 0x342   :  { %v4521_v37 = vpop.f32.mrb[11].mxu0  ;;  %4821 = vmatprep.subr.bf16.mxu0 %v5251_v1 }
 0x343   :  { %v3435_v41 = vadd.f32 %v4519_v36, %v3395_v0 }
 0x344   :  { %v4583_v44 = vpop.f32.mrb[12].mxu1 }
 0x345   :  { %4822 = vmatpush3.bf16.msra.mxu0 %v5252_v27  ;;  %v3475_v43 = vadd.f32 %v4541_v21, %v3435_v41  ;;  %v4584_v45 = vpop.f32.mrb[13].mxu1  ;;  %v5255_v21 = vld [vmem:[%s6599_s7] sm:$0xff]  }
 0x346   :  { %4823 = vmatprep.subr.bf16.mxu0 %v5253_v38  ;;  %v4585_v48 = vadd.f32 %v4584_v45, %v4583_v44  ;;  %v4586_v49 = vpop.f32.mrb[14].mxu1  ;;  %4871 = vmatpush3.bf16.msra.mxu1 %v5255_v21 }
 0x347   :  { %v4587_v50 = vpop.f32.mrb[15].mxu1  ;;  %4872 = vmatprep.subr.bf16.mxu1 %v5281_v3 }
 0x349   :  { %4824 = vmatpush3.bf16.msra.mxu0 %v5254_v42 }
 0x34a   :  { %4873 = vmatpush3.bf16.msra.mxu1 %v5256_v22 }
 0x34c   :  { %3993 = vmatmul.mubr.bf16.vlgmr.msra.gmra.mrb[36].mxu0 %v1303_v47 }
 0x35f   :  { %v4561_v51 = vpop.f32.mrb[12].mxu0 }
 0x360   :  { %v4562_v54 = vpop.f32.mrb[13].mxu0 }
 0x361   :  { %v4563_v55 = vadd.f32 %v4562_v54, %v4561_v51  ;;  %v4564_v56 = vpop.f32.mrb[14].mxu0 }
 0x362   :  { %v4565_v57 = vpop.f32.mrb[15].mxu0 }
 0x363   :  { %v3515_v40 = vadd.f32 %v4563_v55, %v3475_v43 }
 0x364   :  { %v4627_v59 = vpop.f32.mrb[16].mxu1 }
 0x365   :  { %v3555_v58 = vadd.f32 %v4585_v48, %v3515_v40  ;;  %v4628_v46 = vpop.f32.mrb[17].mxu1 }
 0x366   :  { %v4629_v61 = vadd.f32 %v4628_v46, %v4627_v59  ;;  %v4630_v52 = vpop.f32.mrb[18].mxu1 }
 0x367   :  { %v4631_v62 = vpop.f32.mrb[19].mxu1 }
 0x37f   :  { %v4605_v63 = vpop.f32.mrb[16].mxu0 }
 0x380   :  { %v4606_v2 = vpop.f32.mrb[17].mxu0 }
 0x381   :  { %v4607_v60 = vadd.f32 %v4606_v2, %v4605_v63  ;;  %v4608_v4 = vpop.f32.mrb[18].mxu0  ;;  %v4457_v2 = vld [vmem:[%s6600_s8] ss:$0 sm:$0xff] }
 0x382   :  { %v4609_v6 = vpop.f32.mrb[19].mxu0 }
 0x383   :  { %v3595_v7 = vadd.f32 %v4607_v60, %v3555_v58 }
 0x384   :  { %v4671_v10 = vpop.f32.mrb[20].mxu1 }
 0x385   :  { %v3635_v9 = vadd.f32 %v4629_v61, %v3595_v7  ;;  %v4672_v11 = vpop.f32.mrb[21].mxu1 }
 0x386   :  { %v4673_v12 = vadd.f32 %v4672_v11, %v4671_v10  ;;  %v4674_v13 = vpop.f32.mrb[22].mxu1 }
 0x387   :  { %v4675_v8 = vpop.f32.mrb[23].mxu1 }
 0x39f   :  { %v4649_v14 = vpop.f32.mrb[20].mxu0 }
 0x3a0   :  { %v4650_v16 = vpop.f32.mrb[21].mxu0 }
 0x3a1   :  { %v4651_v19 = vadd.f32 %v4650_v16, %v4649_v14  ;;  %v4652_v20 = vpop.f32.mrb[22].mxu0 }
 0x3a2   :  { %v4653_v5 = vpop.f32.mrb[23].mxu0 }
 0x3a3   :  { %v3675_v39 = vadd.f32 %v4651_v19, %v3635_v9 }
 0x3a4   :  { %v4715_v53 = vpop.f32.mrb[24].mxu1 }
 0x3a5   :  { %v3715_v15 = vadd.f32 %v4673_v12, %v3675_v39  ;;  %v4716_v23 = vpop.f32.mrb[25].mxu1 }
 0x3a6   :  { %v4717_v24 = vadd.f32 %v4716_v23, %v4715_v53  ;;  %v4718_v25 = vpop.f32.mrb[26].mxu1 }
 0x3a7   :  { %v4719_v26 = vpop.f32.mrb[27].mxu1 }
 0x3bf   :  { %v4693_v18 = vpop.f32.mrb[24].mxu0 }
 0x3c0   :  { %v4694_v28 = vpop.f32.mrb[25].mxu0 }
 0x3c1   :  { %v4695_v30 = vadd.f32 %v4694_v28, %v4693_v18  ;;  %v4696_v31 = vpop.f32.mrb[26].mxu0 }
 0x3c2   :  { %v4697_v32 = vpop.f32.mrb[27].mxu0 }
 0x3c3   :  { %v3755_v33 = vadd.f32 %v4695_v30, %v3715_v15 }
 0x3c4   :  { %v4759_v1 = vpop.f32.mrb[28].mxu1 }
 0x3c5   :  { %v3795_v34 = vadd.f32 %v4717_v24, %v3755_v33  ;;  %v4760_v17 = vpop.f32.mrb[29].mxu1 }
 0x3c6   :  { %v4761_v35 = vadd.f32 %v4760_v17, %v4759_v1  ;;  %v4762_v0 = vpop.f32.mrb[30].mxu1 }
 0x3c7   :  { %v4763_v36 = vpop.f32.mrb[31].mxu1 }
 0x3df   :  { %v4737_v29 = vpop.f32.mrb[28].mxu0 }
 0x3e0   :  { %v4738_v27 = vpop.f32.mrb[29].mxu0 }
 0x3e1   :  { %v4739_v37 = vadd.f32 %v4738_v27, %v4737_v29  ;;  %v4740_v3 = vpop.f32.mrb[30].mxu0 }
 0x3e2   :  { %v4741_v38 = vpop.f32.mrb[31].mxu0 }
 0x3e3   :  { %v3835_v41 = vadd.f32 %v4739_v37, %v3795_v34 }
 0x3e4   :  { %v4803_v43 = vpop.f32.mrb[32].mxu1 }
 0x3e5   :  { %v3875_v42 = vadd.f32 %v4761_v35, %v3835_v41  ;;  %v4804_v44 = vpop.f32.mrb[33].mxu1 }
 0x3e6   :  { %v4805_v45 = vadd.f32 %v4804_v44, %v4803_v43  ;;  %v4806_v47 = vpop.f32.mrb[34].mxu1 }
 0x3e7   :  { %v4807_v48 = vpop.f32.mrb[35].mxu1 }
 0x3ff   :  { %v4781_v49 = vpop.f32.mrb[32].mxu0 }
 0x400   :  { %v4782_v50 = vpop.f32.mrb[33].mxu0 }
 0x401   :  { %v4783_v51 = vadd.f32 %v4782_v50, %v4781_v49  ;;  %v4784_v54 = vpop.f32.mrb[34].mxu0 }
 0x402   :  { %v4785_v55 = vpop.f32.mrb[35].mxu0 }
 0x403   :  { %v3915_v56 = vadd.f32 %v4783_v51, %v3875_v42 }
 0x405   :  { %v3955_v57 = vadd.f32 %v4805_v45, %v3915_v56 }
 0x41f   :  { %v4825_v40 = vpop.f32.mrb[36].mxu0 }
 0x420   :  { %v4826_v58 = vpop.f32.mrb[37].mxu0 }
 0x421   :  { %v4827_v59 = vadd.f32 %v4826_v58, %v4825_v40  ;;  %v4828_v46 = vpop.f32.mrb[38].mxu0 }
 0x422   :  { %v4829_v61 = vpop.f32.mrb[39].mxu0 }
 0x423   :  { %v3995_v52 = vadd.f32 %v4827_v59, %v3955_v57 }
 0x425   :  { %v4000_v62 = vmax.f32 %v3995_v52, 0.0 }
 0x427   :  { %v4001_v63 = vpack.c.bf16 %v4000_v62, %v4000_v62 }
 0x429   :  { %4875 = vmatmul.mubr.msk.bf16.vlgmr.msra.gmra.mrb[36].mxu1 %vm4025_vm7, %v4001_v63 }
 0x4fc   :  { %v4063_v60 = vpop.f32.mrb[36].mxu1 }
 0x4fd   :  { %v4064_v4 = vadd.f32 %v4457_v2, %v4063_v60  ;;  %v4876_v6 = vpop.f32.mrb[37].mxu1 }
 0x4fe   :  { %v4066_v7 = vpop.f32.mrb[38].mxu1 }
 0x4ff   :  { %v4877_v9 = vpop.f32.mrb[39].mxu1  ;;  %4070 = vst.msk [vmem:[#allocation5] sm:$0x3] %vm4069_vm8, %v4064_v4 }
 0x500   :  { %5268 = shalt.err (!%p5265_p4)
}
 0x501   :  { %s5269_s8 = scalar_lea.hbm %s6601_s9, 32 }
 0x502   :  { %p5270_p5 = scmp.ne.s32.totalorder %s6601_s9, %s5269_s8  ;;  %p5273_p6 = scmp.lt.u32.totalorder %s5269_s8, %s6601_s9 }
 0x504   :  { %p5275_p7 = pnand %p5273_p6, %p5270_p5 }
 0x506   :  { %5278 = shalt.err (!%p5275_p7)
}
 0x507   :  { %4080 = dma.vmem_to_hbm [thread:$0]  %s4078_s24, 32, %s6601_s9, [#allocation6]  }
 0x508   :  { %5279 = dma.done.wait [#allocation6], 32  }
 0x509   :  { %5280 = vsyncadd [#allocation6], 4294967264 }
 0x50a   :  { %4084 = vsyncpa [#allocation6], 1 }

</bundles_post_ra>
